<compile_context>
chip_gen: v6e
topology: v6e:2x2x1
jax: 0.10.0
libtpu: 0.0.40
codegen_flags: <defaults>
</compile_context>

<pallas_src>
import functools

import jax
import jax.numpy as jnp
from jax.experimental import pallas as pl
from jax.experimental.pallas import tpu as pltpu

HIDDEN = 256
OUT_PAD = 128          # final layer padded from 1 -> 128 lanes (lane-dense store)
MIN_TILE = 16          # bf16 packs 2 rows/sublane -> keep tiles multiples of 16


def _round_up(n, m):
    return ((n + m - 1) // m) * m


def _leaky_relu(x, slope=0.2):
    return jnp.where(x > 0, x, slope * x)


def discriminator_kernel(x_ref, w1_ref, b1_ref, w2_ref, b2_ref, w3_ref, b3_ref,
                         o_ref):
    """One batch tile: (TILE_B, K_PAD) -> (TILE_B, OUT_PAD)."""
    compute_dtype = w1_ref.dtype
    # x arrives in its native dtype (single HBM pass); cast here, hides under DMA.
    x = x_ref[...].astype(compute_dtype)

    # Linear(image_size, 256) + LeakyReLU(0.2)   (bf16 operands, f32 accum)
    h = jnp.dot(x, w1_ref[...], preferred_element_type=jnp.float32) + b1_ref[...]
    h = _leaky_relu(h)

    # Linear(256, 256) + LeakyReLU(0.2)
    h = jnp.dot(h.astype(compute_dtype), w2_ref[...],
                preferred_element_type=jnp.float32) + b2_ref[...]
    h = _leaky_relu(h)

    # Linear(256, 1) padded to 128 lanes + Sigmoid
    h = jnp.dot(h.astype(compute_dtype), w3_ref[...],
                preferred_element_type=jnp.float32) + b3_ref[...]
    # sigmoid: exp on EUP, divide -> EUP reciprocal (frees the VALU slot)
    o_ref[...] = pl.reciprocal(1.0 + jnp.exp(-h), approx=True)


def _prepare_params(params, compute_dtype, k_pad):
    """Cast weights to the matmul dtype; pad K to k_pad, final layer to 128 lanes."""
    w1, b1, w2, b2, w3, b3 = params
    image_size = w1.shape[0]
    if k_pad != image_size:
        w1 = jnp.pad(w1, ((0, k_pad - image_size), (0, 0)))
    w3p = jnp.zeros((HIDDEN, OUT_PAD), jnp.float32).at[:, :1].set(w3)
    b3p = jnp.zeros((1, OUT_PAD), jnp.float32).at[:, :1].set(b3)
    return (w1.astype(compute_dtype), b1.astype(jnp.float32).reshape(1, HIDDEN),
            w2.astype(compute_dtype), b2.astype(jnp.float32).reshape(1, HIDDEN),
            w3p.astype(compute_dtype), b3p.astype(jnp.float32))


def discriminator_forward(x, params, *, compute_dtype=jnp.bfloat16, tile_b=512):
    """x: (B, C, H, W) or (B, image_size). Returns (B, 1) float32."""
    b = x.shape[0]
    x2d = x.reshape(b, -1)                      # native dtype; cast happens in-kernel
    image_size = x2d.shape[1]
    k_pad = _round_up(image_size, 128)          # lane-aligned K (matters on v5e MXU)

    w1, b1, w2, b2, w3, b3 = _prepare_params(params, compute_dtype, k_pad)

    x_itm = x2d.dtype.itemsize
    c_itm = jnp.dtype(compute_dtype).itemsize
    weights_bytes = ((k_pad * HIDDEN + HIDDEN * HIDDEN + HIDDEN * OUT_PAD) * c_itm
                     + (2 * HIDDEN + OUT_PAD) * 4)

    # Per-generation VMEM budget (v7x has only 64 MiB per TensorCore).
    try:
        vmem_cap = int(pltpu.get_tpu_info().vmem_capacity_bytes)
    except Exception:
        vmem_cap = 64 * 1024 * 1024             # conservative (v7x per-TC)
    budget = min((vmem_cap * 3) // 4, 96 * 1024 * 1024)

    # Double-buffered x tile + double-buffered f32 output tile, per row.
    per_row = 2 * k_pad * x_itm + 2 * OUT_PAD * 4
    avail = budget - 2 * weights_bytes - (2 << 20)
    max_tile_b = max(MIN_TILE, (max(avail, 0) // per_row) // MIN_TILE * MIN_TILE)

    b16 = _round_up(b, MIN_TILE)
    tile_b = max(MIN_TILE, (min(tile_b, max_tile_b, b16) // MIN_TILE) * MIN_TILE)
    # v7x megacore: ensure >= 2 grid steps whenever the batch allows it.
    if b16 <= tile_b and b16 >= 2 * MIN_TILE:
        tile_b = _round_up((b16 + 1) // 2, MIN_TILE)

    b_pad = _round_up(b, tile_b)
    pad_rows, pad_cols = b_pad - b, k_pad - image_size
    if pad_rows or pad_cols:
        x2d = jnp.pad(x2d, ((0, pad_rows), (0, pad_cols)))

    est = 2 * weights_bytes + tile_b * per_row + (2 << 20)
    vmem_limit = int(min(budget, max(est, 16 * 1024 * 1024)))

    grid = (b_pad // tile_b,)

    def run(single_buffer_weights):
        if single_buffer_weights:
            def wspec(shape):
                return pl.BlockSpec(shape, lambda i: (0, 0),
                                    pipeline_mode=pl.Buffered(1))
        else:
            def wspec(shape):
                return pl.BlockSpec(shape, lambda i: (0, 0))
        return pl.pallas_call(
            discriminator_kernel,
            out_shape=jax.ShapeDtypeStruct((b_pad, OUT_PAD), jnp.float32),
            grid=grid,
            in_specs=[
                pl.BlockSpec((tile_b, k_pad), lambda i: (i, 0)),   # x (pipelined)
                wspec((k_pad, HIDDEN)),                            # w1 (resident)
                wspec((1, HIDDEN)),                                # b1
                wspec((HIDDEN, HIDDEN)),                           # w2
                wspec((1, HIDDEN)),                                # b2
                wspec((HIDDEN, OUT_PAD)),                          # w3 (padded)
                wspec((1, OUT_PAD)),                               # b3 (padded)
            ],
            out_specs=pl.BlockSpec((tile_b, OUT_PAD), lambda i: (i, 0)),
            compiler_params=pltpu.CompilerParams(
                dimension_semantics=("parallel",),
                vmem_limit_bytes=vmem_limit,
            ),
        )(x2d, w1, b1, w2, b2, w3, b3)

    try:
        out_full = run(True)
    except Exception:
        # Fallback if this JAX build rejects single-buffered pipeline_mode.
        out_full = run(False)

    # Drop padded batch rows and padded output lanes.
    return out_full[:b, :1]


def init_params(key, image_size):
    """Deterministic init mimicking nn.Linear's U(-1/sqrt(fan_in), 1/sqrt(fan_in))."""
    ks = jax.random.split(key, 6)

    def lin(kw, kb, fan_in, fan_out):
        bound = 1.0 / jnp.sqrt(jnp.float32(fan_in))
        w = jax.random.uniform(kw, (fan_in, fan_out), jnp.float32, -bound, bound)
        b = jax.random.uniform(kb, (1, fan_out), jnp.float32, -bound, bound)
        return w, b

    w1, b1 = lin(ks[0], ks[1], image_size, HIDDEN)
    w2, b2 = lin(ks[2], ks[3], HIDDEN, HIDDEN)
    w3, b3 = lin(ks[4], ks[5], HIDDEN, 1)
    return (w1, b1, w2, b2, w3, b3)


def discriminator_ref(x, params, compute_dtype=jnp.bfloat16):
    """Pure-JAX reference using the same operand dtypes as the kernel."""
    b = x.shape[0]
    y = x.reshape(b, -1).astype(compute_dtype)
    w1, b1, w2, b2, w3, b3 = params
    w1 = w1.astype(compute_dtype)
    w2 = w2.astype(compute_dtype)
    w3 = w3.astype(compute_dtype)
    h = jnp.dot(y, w1, preferred_element_type=jnp.float32) + b1
    h = _leaky_relu(h)
    h = jnp.dot(h.astype(compute_dtype), w2, preferred_element_type=jnp.float32) + b2
    h = _leaky_relu(h)
    h = jnp.dot(h.astype(compute_dtype), w3, preferred_element_type=jnp.float32) + b3
    return jax.nn.sigmoid(h)


if __name__ == "__main__":
    key = jax.random.PRNGKey(0)
    k_x, k_p = jax.random.split(key)

    # Small image-like input: batch=2, channels=4, spatial=16x16 -> image_size=1024
    B, C, H, W = 2, 4, 16, 16
    image_size = C * H * W
    x = jax.random.normal(k_x, (B, C, H, W), dtype=jnp.float32)

    params = init_params(k_p, image_size)

    fwd = functools.partial(discriminator_forward, compute_dtype=jnp.bfloat16)
    out = jax.block_until_ready(fwd(x, params))

    ref = discriminator_ref(x, params, compute_dtype=jnp.bfloat16)
    assert out.shape == (B, 1), out.shape
    # Tolerance covers MXU accumulation-order differences and the EUP
    # approx-reciprocal in the sigmoid (outputs are in [0, 1]).
    assert jnp.allclose(out, ref, atol=2e-3, rtol=2e-3), (out, ref)

    print("KERNEL_OK")
</pallas_src>

<mosaic_0001>
module attributes {stable_mosaic.version = 11 : i64} {
  func.func @discriminator_kernel(%arg0: i32, %arg1: memref<16x1024xf32, #tpu.memory_space<vmem>>, %arg2: memref<1024x256xbf16, #tpu.memory_space<vmem>>, %arg3: memref<1x256xf32, #tpu.memory_space<vmem>>, %arg4: memref<256x256xbf16, #tpu.memory_space<vmem>>, %arg5: memref<1x256xf32, #tpu.memory_space<vmem>>, %arg6: memref<256x128xbf16, #tpu.memory_space<vmem>>, %arg7: memref<1x128xf32, #tpu.memory_space<vmem>>, %arg8: memref<16x128xf32, #tpu.memory_space<vmem>>) attributes {dimension_semantics = [#tpu.dimension_semantics<parallel>], iteration_bounds = array<i64: 1>, scalar_prefetch = 0 : i64, scratch_operands = 0 : i64, tpu.core_type = #tpu.core_type<tc>, window_params = [{transform_indices = @transform_0, window_bounds = array<i64: 16, 1024>}, {pipeline_mode = #tpu.pipeline_mode<synchronous>, transform_indices = @transform_1, window_bounds = array<i64: 1024, 256>}, {pipeline_mode = #tpu.pipeline_mode<synchronous>, transform_indices = @transform_2, window_bounds = array<i64: 1, 256>}, {pipeline_mode = #tpu.pipeline_mode<synchronous>, transform_indices = @transform_3, window_bounds = array<i64: 256, 256>}, {pipeline_mode = #tpu.pipeline_mode<synchronous>, transform_indices = @transform_4, window_bounds = array<i64: 1, 256>}, {pipeline_mode = #tpu.pipeline_mode<synchronous>, transform_indices = @transform_5, window_bounds = array<i64: 256, 128>}, {pipeline_mode = #tpu.pipeline_mode<synchronous>, transform_indices = @transform_6, window_bounds = array<i64: 1, 128>}, {transform_indices = @transform_7, window_bounds = array<i64: 16, 128>}]} {
    %c0 = arith.constant 0 : index
    %c0_0 = arith.constant 0 : index
    %0 = vector.load %arg1[%c0, %c0_0] : memref<16x1024xf32, #tpu.memory_space<vmem>>, vector<16x1024xf32>
    %1 = arith.truncf %0 : vector<16x1024xf32> to vector<16x1024xbf16>
    %c0_1 = arith.constant 0 : index
    %c0_2 = arith.constant 0 : index
    %2 = vector.load %arg2[%c0_1, %c0_2] : memref<1024x256xbf16, #tpu.memory_space<vmem>>, vector<1024x256xbf16>
    %cst = arith.constant dense<0.000000e+00> : vector<16x256xf32>
    %3 = tpu.matmul %1, %2, %cst {dimension_numbers = #tpu.dot_dimension_numbers<[1], [0], [0], [1], [0, 0, 1, 1], [], []>} : vector<16x1024xbf16>, vector<1024x256xbf16>, vector<16x256xf32> -> vector<16x256xf32>
    %c0_3 = arith.constant 0 : index
    %c0_4 = arith.constant 0 : index
    %4 = vector.load %arg3[%c0_3, %c0_4] : memref<1x256xf32, #tpu.memory_space<vmem>>, vector<1x256xf32>
    %5 = vector.broadcast %4 : vector<1x256xf32> to vector<16x256xf32>
    %6 = arith.addf %3, %5 : vector<16x256xf32>
    %cst_5 = arith.constant 0.000000e+00 : f32
    %7 = vector.broadcast %cst_5 : f32 to vector<16x256xf32>
    %8 = arith.cmpf ogt, %6, %7 : vector<16x256xf32>
    %cst_6 = arith.constant 2.000000e-01 : f32
    %9 = vector.broadcast %cst_6 : f32 to vector<16x256xf32>
    %10 = arith.mulf %9, %6 : vector<16x256xf32>
    %11 = arith.select %8, %6, %10 : vector<16x256xi1>, vector<16x256xf32>
    %12 = arith.truncf %11 : vector<16x256xf32> to vector<16x256xbf16>
    %c0_7 = arith.constant 0 : index
    %c0_8 = arith.constant 0 : index
    %13 = vector.load %arg4[%c0_7, %c0_8] : memref<256x256xbf16, #tpu.memory_space<vmem>>, vector<256x256xbf16>
    %cst_9 = arith.constant dense<0.000000e+00> : vector<16x256xf32>
    %14 = tpu.matmul %12, %13, %cst_9 {dimension_numbers = #tpu.dot_dimension_numbers<[1], [0], [0], [1], [0, 0, 1, 1], [], []>} : vector<16x256xbf16>, vector<256x256xbf16>, vector<16x256xf32> -> vector<16x256xf32>
    %c0_10 = arith.constant 0 : index
    %c0_11 = arith.constant 0 : index
    %15 = vector.load %arg5[%c0_10, %c0_11] : memref<1x256xf32, #tpu.memory_space<vmem>>, vector<1x256xf32>
    %16 = vector.broadcast %15 : vector<1x256xf32> to vector<16x256xf32>
    %17 = arith.addf %14, %16 : vector<16x256xf32>
    %cst_12 = arith.constant 0.000000e+00 : f32
    %18 = vector.broadcast %cst_12 : f32 to vector<16x256xf32>
    %19 = arith.cmpf ogt, %17, %18 : vector<16x256xf32>
    %cst_13 = arith.constant 2.000000e-01 : f32
    %20 = vector.broadcast %cst_13 : f32 to vector<16x256xf32>
    %21 = arith.mulf %20, %17 : vector<16x256xf32>
    %22 = arith.select %19, %17, %21 : vector<16x256xi1>, vector<16x256xf32>
    %23 = arith.truncf %22 : vector<16x256xf32> to vector<16x256xbf16>
    %c0_14 = arith.constant 0 : index
    %c0_15 = arith.constant 0 : index
    %24 = vector.load %arg6[%c0_14, %c0_15] : memref<256x128xbf16, #tpu.memory_space<vmem>>, vector<256x128xbf16>
    %cst_16 = arith.constant dense<0.000000e+00> : vector<16x128xf32>
    %25 = tpu.matmul %23, %24, %cst_16 {dimension_numbers = #tpu.dot_dimension_numbers<[1], [0], [0], [1], [0, 0, 1, 1], [], []>} : vector<16x256xbf16>, vector<256x128xbf16>, vector<16x128xf32> -> vector<16x128xf32>
    %c0_17 = arith.constant 0 : index
    %c0_18 = arith.constant 0 : index
    %26 = vector.load %arg7[%c0_17, %c0_18] : memref<1x128xf32, #tpu.memory_space<vmem>>, vector<1x128xf32>
    %27 = vector.broadcast %26 : vector<1x128xf32> to vector<16x128xf32>
    %28 = arith.addf %25, %27 : vector<16x128xf32>
    %cst_19 = arith.constant 0.000000e+00 : f32
    %29 = vector.broadcast %cst_19 : f32 to vector<16x128xf32>
    %30 = arith.subf %29, %28 : vector<16x128xf32>
    %31 = math.exp %30 : vector<16x128xf32>
    %cst_20 = arith.constant 1.000000e+00 : f32
    %32 = vector.broadcast %cst_20 : f32 to vector<16x128xf32>
    %33 = arith.addf %32, %31 : vector<16x128xf32>
    %34 = tpu.reciprocal %33 {approx = true} : vector<16x128xf32> -> vector<16x128xf32>
    %c0_21 = arith.constant 0 : index
    %c0_22 = arith.constant 0 : index
    %35 = vector.load %arg8[%c0_21, %c0_22] : memref<16x128xf32, #tpu.memory_space<vmem>>, vector<16x128xf32>
    tpu.vector_store %arg8[%c0_21, %c0_22], %34 {strides = array<i32>} : memref<16x128xf32, #tpu.memory_space<vmem>>, vector<16x128xf32>,
    return
  }
  func.func @transform_0(%arg0: i32) -> (i32, i32) {
    %c0_i32 = arith.constant 0 : i32
    %c0_i32_0 = arith.constant 0 : i32
    return %arg0, %c0_i32 : i32, i32
  }
  func.func @transform_1(%arg0: i32) -> (i32, i32) {
    %c0_i32 = arith.constant 0 : i32
    %c0_i32_0 = arith.constant 0 : i32
    %c0_i32_1 = arith.constant 0 : i32
    return %c0_i32, %c0_i32_0 : i32, i32
  }
  func.func @transform_2(%arg0: i32) -> (i32, i32) {
    %c0_i32 = arith.constant 0 : i32
    %c0_i32_0 = arith.constant 0 : i32
    %c0_i32_1 = arith.constant 0 : i32
    return %c0_i32, %c0_i32_0 : i32, i32
  }
  func.func @transform_3(%arg0: i32) -> (i32, i32) {
    %c0_i32 = arith.constant 0 : i32
    %c0_i32_0 = arith.constant 0 : i32
    %c0_i32_1 = arith.constant 0 : i32
    return %c0_i32, %c0_i32_0 : i32, i32
  }
  func.func @transform_4(%arg0: i32) -> (i32, i32) {
    %c0_i32 = arith.constant 0 : i32
    %c0_i32_0 = arith.constant 0 : i32
    %c0_i32_1 = arith.constant 0 : i32
    return %c0_i32, %c0_i32_0 : i32, i32
  }
  func.func @transform_5(%arg0: i32) -> (i32, i32) {
    %c0_i32 = arith.constant 0 : i32
    %c0_i32_0 = arith.constant 0 : i32
    %c0_i32_1 = arith.constant 0 : i32
    return %c0_i32, %c0_i32_0 : i32, i32
  }
  func.func @transform_6(%arg0: i32) -> (i32, i32) {
    %c0_i32 = arith.constant 0 : i32
    %c0_i32_0 = arith.constant 0 : i32
    %c0_i32_1 = arith.constant 0 : i32
    return %c0_i32, %c0_i32_0 : i32, i32
  }
  func.func @transform_7(%arg0: i32) -> (i32, i32) {
    %c0_i32 = arith.constant 0 : i32
    %c0_i32_0 = arith.constant 0 : i32
    return %arg0, %c0_i32 : i32, i32
  }
}

module attributes {stable_mosaic.version = 11 : i64} {
  func.func @discriminator_kernel(%arg0: i32, %arg1: memref<16x1024xf32, #tpu.memory_space<vmem>>, %arg2: memref<1024x256xbf16, #tpu.memory_space<vmem>>, %arg3: memref<1x256xf32, #tpu.memory_space<vmem>>, %arg4: memref<256x256xbf16, #tpu.memory_space<vmem>>, %arg5: memref<1x256xf32, #tpu.memory_space<vmem>>, %arg6: memref<256x128xbf16, #tpu.memory_space<vmem>>, %arg7: memref<1x128xf32, #tpu.memory_space<vmem>>, %arg8: memref<16x128xf32, #tpu.memory_space<vmem>>) attributes {dimension_semantics = [#tpu.dimension_semantics<parallel>], iteration_bounds = array<i64: 1>, scalar_prefetch = 0 : i64, scratch_operands = 0 : i64, tpu.core_type = #tpu.core_type<tc>, window_params = [{transform_indices = @transform_0, window_bounds = array<i64: 16, 1024>}, {pipeline_mode = #tpu.pipeline_mode<synchronous>, transform_indices = @transform_1, window_bounds = array<i64: 1024, 256>}, {pipeline_mode = #tpu.pipeline_mode<synchronous>, transform_indices = @transform_2, window_bounds = array<i64: 1, 256>}, {pipeline_mode = #tpu.pipeline_mode<synchronous>, transform_indices = @transform_3, window_bounds = array<i64: 256, 256>}, {pipeline_mode = #tpu.pipeline_mode<synchronous>, transform_indices = @transform_4, window_bounds = array<i64: 1, 256>}, {pipeline_mode = #tpu.pipeline_mode<synchronous>, transform_indices = @transform_5, window_bounds = array<i64: 256, 128>}, {pipeline_mode = #tpu.pipeline_mode<synchronous>, transform_indices = @transform_6, window_bounds = array<i64: 1, 128>}, {transform_indices = @transform_7, window_bounds = array<i64: 16, 128>}]} {
    %c0 = arith.constant 0 : index
    %c0_0 = arith.constant 0 : index
    %0 = vector.load %arg1[%c0, %c0_0] : memref<16x1024xf32, #tpu.memory_space<vmem>>, vector<16x1024xf32>
    %1 = arith.truncf %0 : vector<16x1024xf32> to vector<16x1024xbf16>
    %c0_1 = arith.constant 0 : index
    %c0_2 = arith.constant 0 : index
    %2 = vector.load %arg2[%c0_1, %c0_2] : memref<1024x256xbf16, #tpu.memory_space<vmem>>, vector<1024x256xbf16>
    %cst = arith.constant dense<0.000000e+00> : vector<16x256xf32>
    %3 = tpu.matmul %1, %2, %cst {dimension_numbers = #tpu.dot_dimension_numbers<[1], [0], [0], [1], [0, 0, 1, 1], [], []>} : vector<16x1024xbf16>, vector<1024x256xbf16>, vector<16x256xf32> -> vector<16x256xf32>
    %c0_3 = arith.constant 0 : index
    %c0_4 = arith.constant 0 : index
    %4 = vector.load %arg3[%c0_3, %c0_4] : memref<1x256xf32, #tpu.memory_space<vmem>>, vector<1x256xf32>
    %5 = vector.broadcast %4 : vector<1x256xf32> to vector<16x256xf32>
    %6 = arith.addf %3, %5 : vector<16x256xf32>
    %cst_5 = arith.constant 0.000000e+00 : f32
    %7 = vector.broadcast %cst_5 : f32 to vector<16x256xf32>
    %8 = arith.cmpf ogt, %6, %7 : vector<16x256xf32>
    %cst_6 = arith.constant 2.000000e-01 : f32
    %9 = vector.broadcast %cst_6 : f32 to vector<16x256xf32>
    %10 = arith.mulf %9, %6 : vector<16x256xf32>
    %11 = arith.select %8, %6, %10 : vector<16x256xi1>, vector<16x256xf32>
    %12 = arith.truncf %11 : vector<16x256xf32> to vector<16x256xbf16>
    %c0_7 = arith.constant 0 : index
    %c0_8 = arith.constant 0 : index
    %13 = vector.load %arg4[%c0_7, %c0_8] : memref<256x256xbf16, #tpu.memory_space<vmem>>, vector<256x256xbf16>
    %cst_9 = arith.constant dense<0.000000e+00> : vector<16x256xf32>
    %14 = tpu.matmul %12, %13, %cst_9 {dimension_numbers = #tpu.dot_dimension_numbers<[1], [0], [0], [1], [0, 0, 1, 1], [], []>} : vector<16x256xbf16>, vector<256x256xbf16>, vector<16x256xf32> -> vector<16x256xf32>
    %c0_10 = arith.constant 0 : index
    %c0_11 = arith.constant 0 : index
    %15 = vector.load %arg5[%c0_10, %c0_11] : memref<1x256xf32, #tpu.memory_space<vmem>>, vector<1x256xf32>
    %16 = vector.broadcast %15 : vector<1x256xf32> to vector<16x256xf32>
    %17 = arith.addf %14, %16 : vector<16x256xf32>
    %cst_12 = arith.constant 0.000000e+00 : f32
    %18 = vector.broadcast %cst_12 : f32 to vector<16x256xf32>
    %19 = arith.cmpf ogt, %17, %18 : vector<16x256xf32>
    %cst_13 = arith.constant 2.000000e-01 : f32
    %20 = vector.broadcast %cst_13 : f32 to vector<16x256xf32>
    %21 = arith.mulf %20, %17 : vector<16x256xf32>
    %22 = arith.select %19, %17, %21 : vector<16x256xi1>, vector<16x256xf32>
    %23 = arith.truncf %22 : vector<16x256xf32> to vector<16x256xbf16>
    %c0_14 = arith.constant 0 : index
    %c0_15 = arith.constant 0 : index
    %24 = vector.load %arg6[%c0_14, %c0_15] : memref<256x128xbf16, #tpu.memory_space<vmem>>, vector<256x128xbf16>
    %cst_16 = arith.constant dense<0.000000e+00> : vector<16x128xf32>
    %25 = tpu.matmul %23, %24, %cst_16 {dimension_numbers = #tpu.dot_dimension_numbers<[1], [0], [0], [1], [0, 0, 1, 1], [], []>} : vector<16x256xbf16>, vector<256x128xbf16>, vector<16x128xf32> -> vector<16x128xf32>
    %c0_17 = arith.constant 0 : index
    %c0_18 = arith.constant 0 : index
    %26 = vector.load %arg7[%c0_17, %c0_18] : memref<1x128xf32, #tpu.memory_space<vmem>>, vector<1x128xf32>
    %27 = vector.broadcast %26 : vector<1x128xf32> to vector<16x128xf32>
    %28 = arith.addf %25, %27 : vector<16x128xf32>
    %cst_19 = arith.constant 0.000000e+00 : f32
    %29 = vector.broadcast %cst_19 : f32 to vector<16x128xf32>
    %30 = arith.subf %29, %28 : vector<16x128xf32>
    %31 = math.exp %30 : vector<16x128xf32>
    %cst_20 = arith.constant 1.000000e+00 : f32
    %32 = vector.broadcast %cst_20 : f32 to vector<16x128xf32>
    %33 = arith.addf %32, %31 : vector<16x128xf32>
    %34 = tpu.reciprocal %33 {approx = true} : vector<16x128xf32> -> vector<16x128xf32>
    %c0_21 = arith.constant 0 : index
    %c0_22 = arith.constant 0 : index
    %35 = vector.load %arg8[%c0_21, %c0_22] : memref<16x128xf32, #tpu.memory_space<vmem>>, vector<16x128xf32>
    tpu.vector_store %arg8[%c0_21, %c0_22], %34 {strides = array<i32>} : memref<16x128xf32, #tpu.memory_space<vmem>>, vector<16x128xf32>,
    return
  }
  func.func @transform_0(%arg0: i32) -> (i32, i32) {
    %c0_i32 = arith.constant 0 : i32
    %c0_i32_0 = arith.constant 0 : i32
    return %arg0, %c0_i32 : i32, i32
  }
  func.func @transform_1(%arg0: i32) -> (i32, i32) {
    %c0_i32 = arith.constant 0 : i32
    %c0_i32_0 = arith.constant 0 : i32
    %c0_i32_1 = arith.constant 0 : i32
    return %c0_i32, %c0_i32_0 : i32, i32
  }
  func.func @transform_2(%arg0: i32) -> (i32, i32) {
    %c0_i32 = arith.constant 0 : i32
    %c0_i32_0 = arith.constant 0 : i32
    %c0_i32_1 = arith.constant 0 : i32
    return %c0_i32, %c0_i32_0 : i32, i32
  }
  func.func @transform_3(%arg0: i32) -> (i32, i32) {
    %c0_i32 = arith.constant 0 : i32
    %c0_i32_0 = arith.constant 0 : i32
    %c0_i32_1 = arith.constant 0 : i32
    return %c0_i32, %c0_i32_0 : i32, i32
  }
  func.func @transform_4(%arg0: i32) -> (i32, i32) {
    %c0_i32 = arith.constant 0 : i32
    %c0_i32_0 = arith.constant 0 : i32
    %c0_i32_1 = arith.constant 0 : i32
    return %c0_i32, %c0_i32_0 : i32, i32
  }
  func.func @transform_5(%arg0: i32) -> (i32, i32) {
    %c0_i32 = arith.constant 0 : i32
    %c0_i32_0 = arith.constant 0 : i32
    %c0_i32_1 = arith.constant 0 : i32
    return %c0_i32, %c0_i32_0 : i32, i32
  }
  func.func @transform_6(%arg0: i32) -> (i32, i32) {
    %c0_i32 = arith.constant 0 : i32
    %c0_i32_0 = arith.constant 0 : i32
    %c0_i32_1 = arith.constant 0 : i32
    return %c0_i32, %c0_i32_0 : i32, i32
  }
  func.func @transform_7(%arg0: i32) -> (i32, i32) {
    %c0_i32 = arith.constant 0 : i32
    %c0_i32_0 = arith.constant 0 : i32
    return %arg0, %c0_i32 : i32, i32
  }
}

</mosaic_0001>

<bundles_post_ra>
// kernel: tpu_custom_call.1
= control target key start
LH: loop header
LB: loop body
LE: loop exit
PB: predicated region body
PF: predicated region fallthrough
CT: control target
= control target key end

     0   :  { %12 = vsyncpa [#allocation3], 0  ;;  %s2217_s0 = inlined_call_operand.hbm [shape: f32[16,1024], index: 0, kind: input, shape index: {}]   ;;  %s2218_s1 = inlined_call_operand.hbm [shape: bf16[1024,256], index: 1, kind: input, shape index: {}]   ;;  %s2219_s2 = inlined_call_operand.vmem [shape: f32[1,256], index: 2, kind: input, shape index: {}]   ;;  %s2220_s3 = inlined_call_operand.hbm [shape: bf16[256,256], index: 3, kind: input, shape index: {}]   ;;  %s2221_s4 = inlined_call_operand.vmem [shape: f32[1,256], index: 4, kind: input, shape index: {}]   ;;  %s2222_s5 = inlined_call_operand.hbm [shape: bf16[256,128], index: 5, kind: input, shape index: {}]   ;;  %s2223_s6 = inlined_call_operand.vmem [shape: f32[1,128], index: 6, kind: input, shape index: {}]   ;;  %s2224_s7 = inlined_call_operand.hbm [shape: f32[16,128], index: 7, kind: output, shape index: {}]  }
   0x1   :  { %13 = vsyncpa [#allocation6], 0 }
   0x2   :  { %14 = vsyncpa [#allocation9], 0 }
   0x3   :  { %15 = vsyncpa [#allocation4], 0  ;;  %s2122_s24 = smov [#allocation5]  }
   0x4   :  { %s33_s25 = sshll.u32 %s2122_s24, 4  ;;  %s34_s25 = int_to_ptr.vmem [resolvable:$true] %s33_s25 }
   0x5   :  { %s2022_s26 = scalar_lea.vmem %s34_s25, 16384  ;;  %p2027_p1 = scmp.lt.s32.totalorder %s34_s25, %s34_s25 }
   0x6   :  { %p2023_p0 = scmp.ne.s32.totalorder %s34_s25, %s2022_s26  ;;  %p2028_p2 = scmp.lt.s32.totalorder %s2022_s26, %s2022_s26 }
   0x8   :  { %p2029_p3 = por %p2028_p2, %p2027_p1 }
   0xa   :  { %p2030_p4 = pnand %p2029_p3, %p2023_p0 }
   0xc   :  { %2033 = shalt.err (!%p2030_p4)
}
   0xd   :  { %s2123_s27 = smov 128   ;;  %s2124_s28 = smov 8  }
   0xe   :  { %39 = dma.hbm_to_vmem [thread:$0]  %s2218_s1, 16384, %s34_s25, [#allocation6], %s2123_s27, %s2123_s27, %s2124_s28  }
   0xf   :  { %s2125_s8 = smov [#allocation2]  }
  0x10   :  { %s21_s9 = sshll.u32 %s2125_s8, 4  ;;  %s22_s9 = int_to_ptr.vmem [resolvable:$true] %s21_s9 }
  0x11   :  { %s2042_s10 = scalar_lea.vmem %s22_s9, 2048  ;;  %p2047_p6 = scmp.lt.s32.totalorder %s22_s9, %s22_s9 }
  0x12   :  { %p2043_p5 = scmp.ne.s32.totalorder %s22_s9, %s2042_s10  ;;  %p2048_p7 = scmp.lt.s32.totalorder %s2042_s10, %s2042_s10 }
  0x14   :  { %p2049_p8 = por %p2048_p7, %p2047_p6 }
  0x16   :  { %p2050_p9 = pnand %p2049_p8, %p2043_p5 }
  0x18   :  { %2053 = shalt.err (!%p2050_p9)
}
  0x19   :  { %s2126_s11 = smov 1024   ;;  %s2127_s12 = smov 64  }
  0x1a   :  { %27 = dma.hbm_to_vmem [thread:$0]  %s2217_s0, 2048, %s22_s9, [#allocation3], %s2126_s11, %s2126_s11, %s2127_s12  }
  0x1b   :  { %s2128_s15 = smov [#allocation7]   ;;  %s2129_s17 = smov [#allocation8]  }
  0x1c   :  { %s47_s16 = sshll.u32 %s2128_s15, 4  ;;  %s61_s1 = sshll.u32 %s2129_s17, 4  ;;  %s48_s16 = int_to_ptr.vmem [resolvable:$true] %s47_s16  ;;  %s62_s1 = int_to_ptr.vmem [resolvable:$true] %s61_s1 }
  0x1d   :  { %s2062_s18 = scalar_lea.vmem %s48_s16, 4096  ;;  %p2067_p11 = scmp.lt.s32.totalorder %s48_s16, %s48_s16 }
  0x1e   :  { %p2063_p10 = scmp.ne.s32.totalorder %s48_s16, %s2062_s18  ;;  %p2068_p12 = scmp.lt.s32.totalorder %s2062_s18, %s2062_s18 }
  0x20   :  { %p2069_p13 = por %p2068_p12, %p2067_p11 }
  0x22   :  { %p2070_p0 = pnand %p2069_p13, %p2063_p10 }
  0x24   :  { %2073 = shalt.err (!%p2070_p0)
}
  0x25   :  { %53 = dma.hbm_to_vmem [thread:$0]  %s2220_s3, 4096, %s48_s16, [#allocation6], %s2123_s27, %s2123_s27, %s2124_s28  }
  0x26   :  { %s2082_s0 = scalar_lea.vmem %s62_s1, 2048  ;;  %p2087_p2 = scmp.lt.s32.totalorder %s62_s1, %s62_s1 }
  0x27   :  { %p2083_p1 = scmp.ne.s32.totalorder %s62_s1, %s2082_s0  ;;  %p2088_p3 = scmp.lt.s32.totalorder %s2082_s0, %s2082_s0 }
  0x29   :  { %p2089_p4 = por %p2088_p3, %p2087_p2 }
  0x2b   :  { %p2090_p5 = pnand %p2089_p4, %p2083_p1 }
  0x2d   :  { %2093 = shalt.err (!%p2090_p5)
}
  0x2e   :  { %s2130_s21 = smov 4  }
  0x2f   :  { %67 = dma.hbm_to_vmem [thread:$0]  %s2222_s5, 2048, %s62_s1, [#allocation9], %s2127_s12, %s2127_s12, %s2130_s21  }
  0x30   :  { %2114 = dma.done.wait [#allocation3], 2048  }
  0x31   :  { %2115 = vsyncadd [#allocation3], 4294965248 }
  0x32   :  { %2116 = dma.done.wait [#allocation6], 20480  }
  0x33   :  { %2117 = vsyncadd [#allocation6], 4294946816 }
  0x34   :  { %2118 = dma.done.wait [#allocation9], 2048  }
  0x35   :  { %2119 = vsyncadd [#allocation9], 4294965248  ;;  %v1750_v0 = vld [vmem:[#allocation5 + $0x74] ss:$8 sps:$4 sm:$0xff]   ;;  %v1754_v2 = vld [vmem:[#allocation5 + $0x70] ss:$8 sps:$4 sm:$0xff]  }
  0x36   :  { %v1752_v1 = vld [vmem:[#allocation5 + $0x174] ss:$8 sps:$4 sm:$0xff]   ;;  %887 = vmatprep.subr.bf16.mxu0 %v1750_v0  ;;  %v1755_v3 = vld [vmem:[#allocation5 + $0x170] ss:$8 sps:$4 sm:$0xff]   ;;  %v1756_v4 = vld [vmem:[#allocation5 + $0x64] ss:$8 sps:$4 sm:$0xff]  }
  0x37   :  { %930 = vmatprep.subr.bf16.mxu1 %v1752_v1  ;;  %888 = vmatpush1.bf16.msra.mxu0 %v1754_v2  ;;  %v1758_v5 = vld [vmem:[#allocation5 + $0x164] ss:$8 sps:$4 sm:$0xff]   ;;  %v1760_v6 = vld [vmem:[#allocation5 + $0x60] ss:$8 sps:$4 sm:$0xff]   ;;  %v1762_v8 = vld [vmem:[#allocation5 + $0x54] ss:$8 sps:$4 sm:$0xff]  }
  0x38   :  { %931 = vmatpush1.bf16.msra.mxu1 %v1755_v3  ;;  %889 = vmatprep.subr.bf16.mxu0 %v1756_v4  ;;  %v1761_v7 = vld [vmem:[#allocation5 + $0x160] ss:$8 sps:$4 sm:$0xff]   ;;  %v1764_v9 = vld [vmem:[#allocation5 + $0x154] ss:$8 sps:$4 sm:$0xff]   ;;  %v1766_v10 = vld [vmem:[#allocation5 + $0x50] ss:$8 sps:$4 sm:$0xff]  }
  0x39   :  { %932 = vmatprep.subr.bf16.mxu1 %v1758_v5  ;;  %v1767_v11 = vld [vmem:[#allocation5 + $0x150] ss:$8 sps:$4 sm:$0xff]   ;;  %v1768_v12 = vld [vmem:[#allocation5 + $0x44] ss:$8 sps:$4 sm:$0xff]   ;;  %v1772_v14 = vld [vmem:[#allocation5 + $0x40] ss:$8 sps:$4 sm:$0xff]  }
  0x3a   :  { %v1770_v13 = vld [vmem:[#allocation5 + $0x144] ss:$8 sps:$4 sm:$0xff]   ;;  %v1773_v15 = vld [vmem:[#allocation5 + $0x140] ss:$8 sps:$4 sm:$0xff]   ;;  %v1774_v16 = vld [vmem:[#allocation5 + $0x34] ss:$8 sps:$4 sm:$0xff]  }
  0x3b   :  { %890 = vmatpush1.bf16.msra.mxu0 %v1760_v6  ;;  %v1776_v17 = vld [vmem:[#allocation5 + $0x134] ss:$8 sps:$4 sm:$0xff]   ;;  %v1778_v18 = vld [vmem:[#allocation5 + $0x30] ss:$8 sps:$4 sm:$0xff]   ;;  %v1780_v20 = vld [vmem:[#allocation5 + $0x24] ss:$8 sps:$4 sm:$0xff]  }
  0x3c   :  { %933 = vmatpush1.bf16.msra.mxu1 %v1761_v7  ;;  %891 = vmatprep.subr.bf16.mxu0 %v1762_v8  ;;  %v1779_v19 = vld [vmem:[#allocation5 + $0x130] ss:$8 sps:$4 sm:$0xff]   ;;  %v1782_v21 = vld [vmem:[#allocation5 + $0x124] ss:$8 sps:$4 sm:$0xff]   ;;  %v1784_v22 = vld [vmem:[#allocation5 + $0x20] ss:$8 sps:$4 sm:$0xff]  }
  0x3d   :  { %934 = vmatprep.subr.bf16.mxu1 %v1764_v9  ;;  %v1785_v23 = vld [vmem:[#allocation5 + $0x120] ss:$8 sps:$4 sm:$0xff]   ;;  %v1786_v24 = vld [vmem:[#allocation5 + $0x14] ss:$8 sps:$4 sm:$0xff]   ;;  %v1790_v26 = vld [vmem:[#allocation5 + $0x10] ss:$8 sps:$4 sm:$0xff]  }
  0x3e   :  { %v1788_v25 = vld [vmem:[#allocation5 + $0x114] ss:$8 sps:$4 sm:$0xff]   ;;  %v1791_v27 = vld [vmem:[#allocation5 + $0x110] ss:$8 sps:$4 sm:$0xff]   ;;  %v1792_v28 = vld [vmem:[#allocation5 + $0x4] ss:$8 sps:$4 sm:$0xff]  }
  0x3f   :  { %892 = vmatpush1.bf16.msra.mxu0 %v1766_v10  ;;  %v1794_v29 = vld [vmem:[#allocation5 + $0x104] ss:$8 sps:$4 sm:$0xff]   ;;  %v1796_v30 = vld [vmem:[#allocation5] ss:$8 sps:$4 sm:$0xff]   ;;  %v1798_v32 = vld [vmem:[#allocation5 + $0xf4] ss:$8 sps:$4 sm:$0xff]  }
  0x40   :  { %935 = vmatpush1.bf16.msra.mxu1 %v1767_v11  ;;  %893 = vmatprep.subr.bf16.mxu0 %v1768_v12  ;;  %v1797_v31 = vld [vmem:[#allocation5 + $0x100] ss:$8 sps:$4 sm:$0xff]   ;;  %v1800_v33 = vld [vmem:[#allocation5 + $0x1f4] ss:$8 sps:$4 sm:$0xff]   ;;  %v1802_v34 = vld [vmem:[#allocation5 + $0xf0] ss:$8 sps:$4 sm:$0xff]  }
  0x41   :  { %936 = vmatprep.subr.bf16.mxu1 %v1770_v13  ;;  %v1803_v35 = vld [vmem:[#allocation5 + $0x1f0] ss:$8 sps:$4 sm:$0xff]   ;;  %v1804_v36 = vld [vmem:[#allocation5 + $0xe4] ss:$8 sps:$4 sm:$0xff]   ;;  %v1808_v38 = vld [vmem:[#allocation5 + $0xe0] ss:$8 sps:$4 sm:$0xff]  }
  0x42   :  { %v1806_v37 = vld [vmem:[#allocation5 + $0x1e4] ss:$8 sps:$4 sm:$0xff]   ;;  %v1809_v39 = vld [vmem:[#allocation5 + $0x1e0] ss:$8 sps:$4 sm:$0xff]   ;;  %v1810_v40 = vld [vmem:[#allocation5 + $0xd4] ss:$8 sps:$4 sm:$0xff]  }
  0x43   :  { %894 = vmatpush1.bf16.msra.mxu0 %v1772_v14  ;;  %v1812_v41 = vld [vmem:[#allocation5 + $0x1d4] ss:$8 sps:$4 sm:$0xff]   ;;  %v1814_v42 = vld [vmem:[#allocation5 + $0xd0] ss:$8 sps:$4 sm:$0xff]   ;;  %v1816_v44 = vld [vmem:[#allocation5 + $0xc4] ss:$8 sps:$4 sm:$0xff]  }
  0x44   :  { %937 = vmatpush1.bf16.msra.mxu1 %v1773_v15  ;;  %895 = vmatprep.subr.bf16.mxu0 %v1774_v16  ;;  %v1815_v43 = vld [vmem:[#allocation5 + $0x1d0] ss:$8 sps:$4 sm:$0xff]   ;;  %v1818_v45 = vld [vmem:[#allocation5 + $0x1c4] ss:$8 sps:$4 sm:$0xff]   ;;  %v1820_v50 = vld [vmem:[#allocation5 + $0xc0] ss:$8 sps:$4 sm:$0xff]  }
  0x45   :  { %938 = vmatprep.subr.bf16.mxu1 %v1776_v17  ;;  %v84_v46 = vld [vmem:[#allocation2 + $0x8] sm:$0xff]  ;;  %v86_v48 = vld [vmem:[#allocation2 + $0x18] sm:$0xff]  ;;  %v83_v6 = vld [vmem:[#allocation2] sm:$0xff] }
  0x46   :  { %v92_v47 = vld [vmem:[#allocation2 + $0x48] sm:$0xff]  ;;  %v94_v49 = vld [vmem:[#allocation2 + $0x58] sm:$0xff]  ;;  %v91_v7 = vld [vmem:[#allocation2 + $0x40] sm:$0xff] }
  0x47   :  { %896 = vmatpush1.bf16.msra.mxu0 %v1778_v18  ;;  %v1821_v51 = vld [vmem:[#allocation5 + $0x1c0] ss:$8 sps:$4 sm:$0xff]   ;;  %v1822_v52 = vld [vmem:[#allocation5 + $0xb4] ss:$8 sps:$4 sm:$0xff]   ;;  %v100_v53 = vpack.c.bf16 %v92_v47, %v84_v46  ;;  %v102_v54 = vpack.c.bf16 %v94_v49, %v86_v48  ;;  %v1826_v56 = vld [vmem:[#allocation5 + $0xb0] ss:$8 sps:$4 sm:$0xff]   ;;  %v99_v12 = vpack.c.bf16 %v91_v7, %v83_v6 }
  0x48   :  { %939 = vmatpush1.bf16.msra.mxu1 %v1779_v19  ;;  %897 = vmatprep.subr.bf16.mxu0 %v1780_v20  ;;  %v1824_v55 = vld [vmem:[#allocation5 + $0x1b4] ss:$8 sps:$4 sm:$0xff]   ;;  %v1827_v57 = vld [vmem:[#allocation5 + $0x1b0] ss:$8 sps:$4 sm:$0xff]   ;;  %v1828_v58 = vld [vmem:[#allocation5 + $0xa4] ss:$8 sps:$4 sm:$0xff]  }
  0x49   :  { %940 = vmatprep.subr.bf16.mxu1 %v1782_v21  ;;  %919 = vmatprep.mubr.bf16.mxu0 %v100_v53  ;;  %v1830_v59 = vld [vmem:[#allocation5 + $0x1a4] ss:$8 sps:$4 sm:$0xff]   ;;  %v1832_v60 = vld [vmem:[#allocation5 + $0xa0] ss:$8 sps:$4 sm:$0xff]   ;;  %v1834_v62 = vld [vmem:[#allocation5 + $0x94] ss:$8 sps:$4 sm:$0xff]  }
  0x4a   :  { %962 = vmatprep.mubr.bf16.mxu1 %v102_v54  ;;  %v1833_v61 = vld [vmem:[#allocation5 + $0x1a0] ss:$8 sps:$4 sm:$0xff]   ;;  %v1836_v63 = vld [vmem:[#allocation5 + $0x194] ss:$8 sps:$4 sm:$0xff]   ;;  %v1838_v0 = vld [vmem:[#allocation5 + $0x90] ss:$8 sps:$4 sm:$0xff]  }
  0x4b   :  { %898 = vmatpush1.bf16.msra.mxu0 %v1784_v22  ;;  %v1839_v1 = vld [vmem:[#allocation5 + $0x190] ss:$8 sps:$4 sm:$0xff]   ;;  %v1840_v2 = vld [vmem:[#allocation5 + $0x84] ss:$8 sps:$4 sm:$0xff]   ;;  %v1844_v4 = vld [vmem:[#allocation5 + $0x80] ss:$8 sps:$4 sm:$0xff]  }
  0x4c   :  { %941 = vmatpush1.bf16.msra.mxu1 %v1785_v23  ;;  %899 = vmatprep.subr.bf16.mxu0 %v1786_v24  ;;  %v1842_v3 = vld [vmem:[#allocation5 + $0x184] ss:$8 sps:$4 sm:$0xff]   ;;  %v1845_v5 = vld [vmem:[#allocation5 + $0x180] ss:$8 sps:$4 sm:$0xff]   ;;  %v85_v8 = vld [vmem:[#allocation2 + $0x10] sm:$0xff] }
  0x4d   :  { %942 = vmatprep.subr.bf16.mxu1 %v1788_v25  ;;  %v93_v9 = vld [vmem:[#allocation2 + $0x50] sm:$0xff]  ;;  %v1854_v16 = vld [vmem:[#allocation5 + $0x264] ss:$8 sps:$4 sm:$0xff]   ;;  %v1852_v18 = vld [vmem:[#allocation5 + $0x260] ss:$8 sps:$4 sm:$0xff]  }
  0x4e   :  { %v1848_v10 = vld [vmem:[#allocation5 + $0x274] ss:$8 sps:$4 sm:$0xff]   ;;  %v101_v13 = vpack.c.bf16 %v93_v9, %v85_v8  ;;  %v1846_v14 = vld [vmem:[#allocation5 + $0x270] ss:$8 sps:$4 sm:$0xff]   ;;  %v1857_v17 = vld [vmem:[#allocation5 + $0x364] ss:$8 sps:$4 sm:$0xff]  }
  0x4f   :  { %900 = vmatpush1.bf16.msra.mxu0 %v1790_v26  ;;  %v1851_v11 = vld [vmem:[#allocation5 + $0x374] ss:$8 sps:$4 sm:$0xff]   ;;  %v1849_v15 = vld [vmem:[#allocation5 + $0x370] ss:$8 sps:$4 sm:$0xff]   ;;  %v1855_v19 = vld [vmem:[#allocation5 + $0x360] ss:$8 sps:$4 sm:$0xff]  }
  0x50   :  { %943 = vmatpush1.bf16.msra.mxu1 %v1791_v27  ;;  %901 = vmatprep.subr.bf16.mxu0 %v1792_v28  ;;  %v1860_v20 = vld [vmem:[#allocation5 + $0x254] ss:$8 sps:$4 sm:$0xff]   ;;  %v1858_v22 = vld [vmem:[#allocation5 + $0x250] ss:$8 sps:$4 sm:$0xff]   ;;  %v1866_v24 = vld [vmem:[#allocation5 + $0x244] ss:$8 sps:$4 sm:$0xff]  }
  0x51   :  { %944 = vmatprep.subr.bf16.mxu1 %v1794_v29  ;;  %v1863_v21 = vld [vmem:[#allocation5 + $0x354] ss:$8 sps:$4 sm:$0xff]   ;;  %v1861_v23 = vld [vmem:[#allocation5 + $0x350] ss:$8 sps:$4 sm:$0xff]   ;;  %v1869_v25 = vld [vmem:[#allocation5 + $0x344] ss:$8 sps:$4 sm:$0xff]  }
  0x52   :  { %v1864_v26 = vld [vmem:[#allocation5 + $0x240] ss:$8 sps:$4 sm:$0xff]   ;;  %v1872_v28 = vld [vmem:[#allocation5 + $0x234] ss:$8 sps:$4 sm:$0xff]   ;;  %v1897_v53 = vld [vmem:[#allocation5 + $0x3f0] ss:$8 sps:$4 sm:$0xff]  }
  0x53   :  { %902 = vmatpush1.bf16.msra.mxu0 %v1796_v30  ;;  %v1867_v27 = vld [vmem:[#allocation5 + $0x340] ss:$8 sps:$4 sm:$0xff]   ;;  %v1875_v29 = vld [vmem:[#allocation5 + $0x334] ss:$8 sps:$4 sm:$0xff]   ;;  %v1870_v30 = vld [vmem:[#allocation5 + $0x230] ss:$8 sps:$4 sm:$0xff]  }
  0x54   :  { %945 = vmatpush1.bf16.msra.mxu1 %v1797_v31  ;;  %903 = vmatprep.subr.bf16.mxu0 %v1798_v32  ;;  %v1873_v31 = vld [vmem:[#allocation5 + $0x330] ss:$8 sps:$4 sm:$0xff]   ;;  %v1878_v32 = vld [vmem:[#allocation5 + $0x224] ss:$8 sps:$4 sm:$0xff]   ;;  %v1888_v47 = vld [vmem:[#allocation5 + $0x200] ss:$8 sps:$4 sm:$0xff]  }
  0x55   :  { %946 = vmatprep.subr.bf16.mxu1 %v1800_v33  ;;  %v1881_v33 = vld [vmem:[#allocation5 + $0x324] ss:$8 sps:$4 sm:$0xff]   ;;  %v98_v46 = vld [vmem:[#allocation2 + $0x78] sm:$0xff]  ;;  %v1891_v48 = vld [vmem:[#allocation5 + $0x300] ss:$8 sps:$4 sm:$0xff]  }
  0x56   :  { %v1902_v54 = vld [vmem:[#allocation5 + $0x2e4] ss:$8 sps:$4 sm:$0xff]   ;;  %v1924_v8 = vld [vmem:[#allocation5 + $0x2a0] ss:$8 sps:$4 sm:$0xff]  }
  0x57   :  { %904 = vmatpush2.bf16.msra.mxu0 %v1802_v34  ;;  %v1876_v34 = vld [vmem:[#allocation5 + $0x220] ss:$8 sps:$4 sm:$0xff]   ;;  %v1926_v6 = vld [vmem:[#allocation5 + $0x2a4] ss:$8 sps:$4 sm:$0xff]  }
  0x58   :  { %947 = vmatpush2.bf16.msra.mxu1 %v1803_v35  ;;  %905 = vmatprep.subr.bf16.mxu0 %v1804_v36  ;;  %v1879_v35 = vld [vmem:[#allocation5 + $0x320] ss:$8 sps:$4 sm:$0xff]   ;;  %v1884_v36 = vld [vmem:[#allocation5 + $0x214] ss:$8 sps:$4 sm:$0xff]   ;;  %v1929_v7 = vld [vmem:[#allocation5 + $0x3a4] ss:$8 sps:$4 sm:$0xff]  }
  0x59   :  { %948 = vmatprep.subr.bf16.mxu1 %v1806_v37  ;;  %v1887_v37 = vld [vmem:[#allocation5 + $0x314] ss:$8 sps:$4 sm:$0xff]   ;;  %v1927_v9 = vld [vmem:[#allocation5 + $0x3a0] ss:$8 sps:$4 sm:$0xff]  }
  0x5b   :  { %906 = vmatpush2.bf16.msra.mxu0 %v1808_v38  ;;  %v1882_v38 = vld [vmem:[#allocation5 + $0x210] ss:$8 sps:$4 sm:$0xff]  }
  0x5c   :  { %949 = vmatpush2.bf16.msra.mxu1 %v1809_v39  ;;  %907 = vmatprep.subr.bf16.mxu0 %v1810_v40  ;;  %v1885_v39 = vld [vmem:[#allocation5 + $0x310] ss:$8 sps:$4 sm:$0xff]   ;;  %v88_v40 = vld [vmem:[#allocation2 + $0x28] sm:$0xff] }
  0x5d   :  { %950 = vmatprep.subr.bf16.mxu1 %v1812_v41  ;;  %v96_v41 = vld [vmem:[#allocation2 + $0x68] sm:$0xff] }
  0x5f   :  { %908 = vmatpush2.bf16.msra.mxu0 %v1814_v42  ;;  %v90_v42 = vld [vmem:[#allocation2 + $0x38] sm:$0xff] }
  0x60   :  { %951 = vmatpush2.bf16.msra.mxu1 %v1815_v43  ;;  %909 = vmatprep.subr.bf16.mxu0 %v1816_v44  ;;  %v1890_v43 = vld [vmem:[#allocation5 + $0x204] ss:$8 sps:$4 sm:$0xff]   ;;  %v106_v49 = vpack.c.bf16 %v98_v46, %v90_v42 }
  0x61   :  { %952 = vmatprep.subr.bf16.mxu1 %v1818_v45  ;;  %v1893_v44 = vld [vmem:[#allocation5 + $0x304] ss:$8 sps:$4 sm:$0xff]   ;;  %v104_v45 = vpack.c.bf16 %v96_v41, %v88_v40  ;;  %v1968_v40 = vld [vmem:[#allocation7 + $0xf4] ss:$8 sps:$4 sm:$0xff]   ;;  %v1966_v41 = vld [vmem:[#allocation7 + $0xf0] ss:$8 sps:$4 sm:$0xff]  }
  0x62   :  { %v1971_v42 = vld [vmem:[#allocation7 + $0xe4] ss:$8 sps:$4 sm:$0xff]  }
  0x63   :  { %910 = vmatpush2.bf16.msra.mxu0 %v1820_v50  ;;  %v1896_v50 = vld [vmem:[#allocation5 + $0x2f4] ss:$8 sps:$4 sm:$0xff]   ;;  %v1977_v46 = vld [vmem:[#allocation7 + $0xc4] ss:$8 sps:$4 sm:$0xff]  }
  0x64   :  { %953 = vmatpush2.bf16.msra.mxu1 %v1821_v51  ;;  %911 = vmatprep.subr.bf16.mxu0 %v1822_v52  ;;  %v1899_v51 = vld [vmem:[#allocation5 + $0x3f4] ss:$8 sps:$4 sm:$0xff]   ;;  %v1894_v52 = vld [vmem:[#allocation5 + $0x2f0] ss:$8 sps:$4 sm:$0xff]  }
  0x65   :  { %954 = vmatprep.subr.bf16.mxu1 %v1824_v55  ;;  %v1905_v55 = vld [vmem:[#allocation5 + $0x3e4] ss:$8 sps:$4 sm:$0xff]  }
  0x67   :  { %912 = vmatpush2.bf16.msra.mxu0 %v1826_v56  ;;  %v1900_v56 = vld [vmem:[#allocation5 + $0x2e0] ss:$8 sps:$4 sm:$0xff]  }
  0x68   :  { %955 = vmatpush2.bf16.msra.mxu1 %v1827_v57  ;;  %913 = vmatprep.subr.bf16.mxu0 %v1828_v58  ;;  %v1903_v57 = vld [vmem:[#allocation5 + $0x3e0] ss:$8 sps:$4 sm:$0xff]   ;;  %v1908_v58 = vld [vmem:[#allocation5 + $0x2d4] ss:$8 sps:$4 sm:$0xff]  }
  0x69   :  { %956 = vmatprep.subr.bf16.mxu1 %v1830_v59  ;;  %v1911_v59 = vld [vmem:[#allocation5 + $0x3d4] ss:$8 sps:$4 sm:$0xff]  }
  0x6b   :  { %914 = vmatpush2.bf16.msra.mxu0 %v1832_v60  ;;  %v1906_v60 = vld [vmem:[#allocation5 + $0x2d0] ss:$8 sps:$4 sm:$0xff]  }
  0x6c   :  { %957 = vmatpush2.bf16.msra.mxu1 %v1833_v61  ;;  %915 = vmatprep.subr.bf16.mxu0 %v1834_v62  ;;  %v1909_v61 = vld [vmem:[#allocation5 + $0x3d0] ss:$8 sps:$4 sm:$0xff]   ;;  %v1914_v62 = vld [vmem:[#allocation5 + $0x2c4] ss:$8 sps:$4 sm:$0xff]  }
  0x6d   :  { %958 = vmatprep.subr.bf16.mxu1 %v1836_v63  ;;  %v1917_v63 = vld [vmem:[#allocation5 + $0x3c4] ss:$8 sps:$4 sm:$0xff]  }
  0x6f   :  { %916 = vmatpush2.bf16.msra.mxu0 %v1838_v0  ;;  %v1912_v0 = vld [vmem:[#allocation5 + $0x2c0] ss:$8 sps:$4 sm:$0xff]  }
  0x70   :  { %959 = vmatpush2.bf16.msra.mxu1 %v1839_v1  ;;  %917 = vmatprep.subr.bf16.mxu0 %v1840_v2  ;;  %v1915_v1 = vld [vmem:[#allocation5 + $0x3c0] ss:$8 sps:$4 sm:$0xff]   ;;  %v1920_v2 = vld [vmem:[#allocation5 + $0x2b4] ss:$8 sps:$4 sm:$0xff]  }
  0x71   :  { %960 = vmatprep.subr.bf16.mxu1 %v1842_v3  ;;  %v1923_v3 = vld [vmem:[#allocation5 + $0x3b4] ss:$8 sps:$4 sm:$0xff]  }
  0x73   :  { %918 = vmatpush2.bf16.msra.mxu0 %v1844_v4  ;;  %v1918_v4 = vld [vmem:[#allocation5 + $0x2b0] ss:$8 sps:$4 sm:$0xff]  }
  0x74   :  { %961 = vmatpush2.bf16.msra.mxu1 %v1845_v5  ;;  %973 = vmatprep.subr.bf16.mxu0 %v1848_v10  ;;  %v1921_v5 = vld [vmem:[#allocation5 + $0x3b0] ss:$8 sps:$4 sm:$0xff]   ;;  %v1932_v10 = vld [vmem:[#allocation5 + $0x294] ss:$8 sps:$4 sm:$0xff]  }
  0x75   :  { %1016 = vmatprep.subr.bf16.mxu1 %v1851_v11  ;;  %v1935_v11 = vld [vmem:[#allocation5 + $0x394] ss:$8 sps:$4 sm:$0xff]  }
  0x76   :  { %920 = vmatmul.mubr.bf16.vlgmr.msra.gmra.mxu0 %v99_v12  ;;  %v1930_v12 = vld [vmem:[#allocation5 + $0x290] ss:$8 sps:$4 sm:$0xff]  }
  0x77   :  { %963 = vmatmul.mubr.bf16.vlgmr.msra.gmra.mxu1 %v101_v13  ;;  %974 = vmatpush1.bf16.msra.mxu0 %v1846_v14  ;;  %v1933_v13 = vld [vmem:[#allocation5 + $0x390] ss:$8 sps:$4 sm:$0xff]   ;;  %v1938_v14 = vld [vmem:[#allocation5 + $0x284] ss:$8 sps:$4 sm:$0xff]  }
  0x78   :  { %1017 = vmatpush1.bf16.msra.mxu1 %v1849_v15  ;;  %975 = vmatprep.subr.bf16.mxu0 %v1854_v16  ;;  %v1941_v15 = vld [vmem:[#allocation5 + $0x384] ss:$8 sps:$4 sm:$0xff]   ;;  %v1936_v16 = vld [vmem:[#allocation5 + $0x280] ss:$8 sps:$4 sm:$0xff]  }
  0x79   :  { %1018 = vmatprep.subr.bf16.mxu1 %v1857_v17  ;;  %1005 = vmatprep.mubr.bf16.mxu0 %v104_v45  ;;  %v1939_v17 = vld [vmem:[#allocation5 + $0x380] ss:$8 sps:$4 sm:$0xff]   ;;  %v1972_v45 = vld [vmem:[#allocation7 + $0xd0] ss:$8 sps:$4 sm:$0xff]  }
  0x7a   :  { %1048 = vmatprep.mubr.bf16.mxu1 %v106_v49  ;;  %v1978_v49 = vld [vmem:[#allocation7 + $0xb0] ss:$8 sps:$4 sm:$0xff]  }
  0x7b   :  { %976 = vmatpush1.bf16.msra.mxu0 %v1852_v18  ;;  %v87_v18 = vld [vmem:[#allocation2 + $0x20] sm:$0xff] }
  0x7c   :  { %1019 = vmatpush1.bf16.msra.mxu1 %v1855_v19  ;;  %977 = vmatprep.subr.bf16.mxu0 %v1860_v20  ;;  %v95_v19 = vld [vmem:[#allocation2 + $0x60] sm:$0xff]  ;;  %v89_v20 = vld [vmem:[#allocation2 + $0x30] sm:$0xff] }
  0x7d   :  { %1020 = vmatprep.subr.bf16.mxu1 %v1863_v21  ;;  %v97_v21 = vld [vmem:[#allocation2 + $0x70] sm:$0xff] }
  0x7f   :  { %978 = vmatpush1.bf16.msra.mxu0 %v1858_v22  ;;  %v103_v22 = vpack.c.bf16 %v95_v19, %v87_v18 }
  0x80   :  { %1021 = vmatpush1.bf16.msra.mxu1 %v1861_v23  ;;  %979 = vmatprep.subr.bf16.mxu0 %v1866_v24  ;;  %v105_v23 = vpack.c.bf16 %v97_v21, %v89_v20  ;;  %v1942_v24 = vld [vmem:[#allocation7 + $0x70] ss:$8 sps:$4 sm:$0xff]  }
  0x81   :  { %1022 = vmatprep.subr.bf16.mxu1 %v1869_v25  ;;  %v1944_v25 = vld [vmem:[#allocation7 + $0x74] ss:$8 sps:$4 sm:$0xff]  }
  0x83   :  { %980 = vmatpush1.bf16.msra.mxu0 %v1864_v26  ;;  %v1947_v26 = vld [vmem:[#allocation7 + $0x64] ss:$8 sps:$4 sm:$0xff]  }
  0x84   :  { %1023 = vmatpush1.bf16.msra.mxu1 %v1867_v27  ;;  %981 = vmatprep.subr.bf16.mxu0 %v1872_v28  ;;  %v1945_v27 = vld [vmem:[#allocation7 + $0x60] ss:$8 sps:$4 sm:$0xff]   ;;  %v1950_v28 = vld [vmem:[#allocation7 + $0x54] ss:$8 sps:$4 sm:$0xff]  }
  0x85   :  { %1024 = vmatprep.subr.bf16.mxu1 %v1875_v29  ;;  %v1948_v29 = vld [vmem:[#allocation7 + $0x50] ss:$8 sps:$4 sm:$0xff]  }
  0x87   :  { %982 = vmatpush1.bf16.msra.mxu0 %v1870_v30  ;;  %v1953_v30 = vld [vmem:[#allocation7 + $0x44] ss:$8 sps:$4 sm:$0xff]  }
  0x88   :  { %1025 = vmatpush1.bf16.msra.mxu1 %v1873_v31  ;;  %983 = vmatprep.subr.bf16.mxu0 %v1878_v32  ;;  %v1951_v31 = vld [vmem:[#allocation7 + $0x40] ss:$8 sps:$4 sm:$0xff]   ;;  %v1956_v32 = vld [vmem:[#allocation7 + $0x34] ss:$8 sps:$4 sm:$0xff]  }
  0x89   :  { %1026 = vmatprep.subr.bf16.mxu1 %v1881_v33  ;;  %v1954_v33 = vld [vmem:[#allocation7 + $0x30] ss:$8 sps:$4 sm:$0xff]  }
  0x8b   :  { %984 = vmatpush1.bf16.msra.mxu0 %v1876_v34  ;;  %v1959_v34 = vld [vmem:[#allocation7 + $0x24] ss:$8 sps:$4 sm:$0xff]  }
  0x8c   :  { %1027 = vmatpush1.bf16.msra.mxu1 %v1879_v35  ;;  %985 = vmatprep.subr.bf16.mxu0 %v1884_v36  ;;  %v1957_v35 = vld [vmem:[#allocation7 + $0x20] ss:$8 sps:$4 sm:$0xff]   ;;  %v1962_v36 = vld [vmem:[#allocation7 + $0x14] ss:$8 sps:$4 sm:$0xff]  }
  0x8d   :  { %1028 = vmatprep.subr.bf16.mxu1 %v1887_v37  ;;  %v1960_v37 = vld [vmem:[#allocation7 + $0x10] ss:$8 sps:$4 sm:$0xff]  }
  0x8f   :  { %986 = vmatpush1.bf16.msra.mxu0 %v1882_v38  ;;  %v1965_v38 = vld [vmem:[#allocation7 + $0x4] ss:$8 sps:$4 sm:$0xff]  }
  0x90   :  { %1029 = vmatpush1.bf16.msra.mxu1 %v1885_v39  ;;  %987 = vmatprep.subr.bf16.mxu0 %v1890_v43  ;;  %v1963_v39 = vld [vmem:[#allocation7] ss:$8 sps:$4 sm:$0xff]  }
  0x91   :  { %1030 = vmatprep.subr.bf16.mxu1 %v1893_v44  ;;  %v1969_v43 = vld [vmem:[#allocation7 + $0xe0] ss:$8 sps:$4 sm:$0xff]   ;;  %v1974_v44 = vld [vmem:[#allocation7 + $0xd4] ss:$8 sps:$4 sm:$0xff]  }
  0x93   :  { %988 = vmatpush1.bf16.msra.mxu0 %v1888_v47  ;;  %v1975_v47 = vld [vmem:[#allocation7 + $0xc0] ss:$8 sps:$4 sm:$0xff]  }
  0x94   :  { %1031 = vmatpush1.bf16.msra.mxu1 %v1891_v48  ;;  %989 = vmatprep.subr.bf16.mxu0 %v1896_v50  ;;  %v1980_v48 = vld [vmem:[#allocation7 + $0xb4] ss:$8 sps:$4 sm:$0xff]   ;;  %v1983_v50 = vld [vmem:[#allocation7 + $0xa4] ss:$8 sps:$4 sm:$0xff]  }
  0x95   :  { %1032 = vmatprep.subr.bf16.mxu1 %v1899_v51  ;;  %v1981_v51 = vld [vmem:[#allocation7 + $0xa0] ss:$8 sps:$4 sm:$0xff]  }
  0x97   :  { %990 = vmatpush2.bf16.msra.mxu0 %v1894_v52  ;;  %v1986_v52 = vld [vmem:[#allocation7 + $0x94] ss:$8 sps:$4 sm:$0xff]  }
  0x98   :  { %1033 = vmatpush2.bf16.msra.mxu1 %v1897_v53  ;;  %991 = vmatprep.subr.bf16.mxu0 %v1902_v54  ;;  %v1984_v53 = vld [vmem:[#allocation7 + $0x90] ss:$8 sps:$4 sm:$0xff]   ;;  %v1987_v54 = vld [vmem:[#allocation7 + $0x80] ss:$8 sps:$4 sm:$0xff]  }
  0x99   :  { %1034 = vmatprep.subr.bf16.mxu1 %v1905_v55  ;;  %v1989_v55 = vld [vmem:[#allocation7 + $0x84] ss:$8 sps:$4 sm:$0xff]  }
  0x9b   :  { %992 = vmatpush2.bf16.msra.mxu0 %v1900_v56  ;;  %v1990_v56 = vld [vmem:[#allocation8 + $0x78] sm:$0xff]  }
  0x9c   :  { %1035 = vmatpush2.bf16.msra.mxu1 %v1903_v57  ;;  %993 = vmatprep.subr.bf16.mxu0 %v1908_v58  ;;  %v1991_v57 = vld [vmem:[#allocation8 + $0x38] sm:$0xff]   ;;  %v1992_v58 = vld [vmem:[#allocation8 + $0x70] sm:$0xff]  }
  0x9d   :  { %1036 = vmatprep.subr.bf16.mxu1 %v1911_v59  ;;  %v1993_v59 = vld [vmem:[#allocation8 + $0x30] sm:$0xff]  }
  0x9f   :  { %994 = vmatpush2.bf16.msra.mxu0 %v1906_v60  ;;  %v1994_v60 = vld [vmem:[#allocation8 + $0x68] sm:$0xff]  }
  0xa0   :  { %1037 = vmatpush2.bf16.msra.mxu1 %v1909_v61  ;;  %995 = vmatprep.subr.bf16.mxu0 %v1914_v62  ;;  %v1995_v61 = vld [vmem:[#allocation8 + $0x28] sm:$0xff]   ;;  %v1996_v62 = vld [vmem:[#allocation8 + $0x60] sm:$0xff]  }
  0xa1   :  { %1038 = vmatprep.subr.bf16.mxu1 %v1917_v63  ;;  %v1997_v63 = vld [vmem:[#allocation8 + $0x20] sm:$0xff]  }
  0xa3   :  { %996 = vmatpush2.bf16.msra.mxu0 %v1912_v0  ;;  %v1998_v0 = vld [vmem:[#allocation8 + $0x58] sm:$0xff]  }
  0xa4   :  { %1039 = vmatpush2.bf16.msra.mxu1 %v1915_v1  ;;  %997 = vmatprep.subr.bf16.mxu0 %v1920_v2  ;;  %v237_v1 = vlaneseq }
  0xa5   :  { %1040 = vmatprep.subr.bf16.mxu1 %v1923_v3 }
  0xa6   :  { %v2190_v2 = vshrl.u32 %v237_v1, 7 }
  0xa7   :  { %998 = vmatpush2.bf16.msra.mxu0 %v1918_v4 }
  0xa8   :  { %1041 = vmatpush2.bf16.msra.mxu1 %v1921_v5  ;;  %999 = vmatprep.subr.bf16.mxu0 %v1926_v6  ;;  %v239_v5 = vsub.s32 0, %v2190_v2  ;;  %v243_v6 = vsub.s32 1, %v2190_v2 }
  0xa9   :  { %1042 = vmatprep.subr.bf16.mxu1 %v1929_v7  ;;  %v235_v7 = vld [vmem:[%s2219_s2] sm:$0x3] }
  0xab   :  { %1000 = vmatpush2.bf16.msra.mxu0 %v1924_v8 }
  0xac   :  { %1043 = vmatpush2.bf16.msra.mxu1 %v1927_v9  ;;  %1001 = vmatprep.subr.bf16.mxu0 %v1932_v10  ;;  %v240_v10 = vrot.slane %v235_v7, %v239_v5 }
  0xad   :  { %1044 = vmatprep.subr.bf16.mxu1 %v1935_v11  ;;  %v244_v11 = vrot.slane %v235_v7, %v243_v6 }
  0xaf   :  { %1002 = vmatpush2.bf16.msra.mxu0 %v1930_v12 }
  0xb0   :  { %1045 = vmatpush2.bf16.msra.mxu1 %v1933_v13  ;;  %1003 = vmatprep.subr.bf16.mxu0 %v1938_v14 }
  0xb1   :  { %1046 = vmatprep.subr.bf16.mxu1 %v1941_v15 }
  0xb3   :  { %1004 = vmatpush2.bf16.msra.mxu0 %v1936_v16 }
  0xb4   :  { %1047 = vmatpush2.bf16.msra.mxu1 %v1939_v17  ;;  %1277 = vmatprep.subr.bf16.mxu0 %v1944_v25 }
  0xb5   :  { %1718 = vmatprep.subr.bf16.mxu1 %v1990_v56  ;;  %v2005_v56 = vld [vmem:[#allocation8] sm:$0xff]  }
  0xb6   :  { %1006 = vmatmul.mubr.bf16.vlgmr.msra.gmra.mxu0 %v103_v22 }
  0xb7   :  { %1049 = vmatmul.mubr.bf16.vlgmr.msra.gmra.mxu1 %v105_v23  ;;  %1278 = vmatpush1.bf16.msra.mxu0 %v1942_v24 }
  0xb8   :  { %1279 = vmatprep.subr.bf16.mxu0 %v1947_v26  ;;  %1719 = vmatpush3.bf16.msra.mxu1 %v1991_v57  ;;  %v1105_v57 = vld [vmem:[%s2221_s4] sm:$0x3] }
  0xb9   :  { %1720 = vmatprep.subr.bf16.mxu1 %v1992_v58  ;;  %v1114_v58 = vrot.slane %v1105_v57, %v243_v6 }
  0xbb   :  { %1280 = vmatpush1.bf16.msra.mxu0 %v1945_v27 }
  0xbc   :  { %1281 = vmatprep.subr.bf16.mxu0 %v1950_v28  ;;  %1721 = vmatpush3.bf16.msra.mxu1 %v1993_v59  ;;  %v1110_v59 = vrot.slane %v1105_v57, %v239_v5 }
  0xbd   :  { %1722 = vmatprep.subr.bf16.mxu1 %v1994_v60 }
  0xbf   :  { %1282 = vmatpush1.bf16.msra.mxu0 %v1948_v29 }
  0xc0   :  { %1283 = vmatprep.subr.bf16.mxu0 %v1953_v30  ;;  %1723 = vmatpush3.bf16.msra.mxu1 %v1995_v61 }
  0xc1   :  { %1724 = vmatprep.subr.bf16.mxu1 %v1996_v62 }
  0xc3   :  { %1284 = vmatpush1.bf16.msra.mxu0 %v1951_v31 }
  0xc4   :  { %1285 = vmatprep.subr.bf16.mxu0 %v1956_v32  ;;  %1725 = vmatpush3.bf16.msra.mxu1 %v1997_v63 }
  0xc5   :  { %1726 = vmatprep.subr.bf16.mxu1 %v1998_v0 }
  0xc7   :  { %1286 = vmatpush1.bf16.msra.mxu0 %v1954_v33 }
  0xc8   :  { %1287 = vmatprep.subr.bf16.mxu0 %v1959_v34 }
  0xcb   :  { %1288 = vmatpush1.bf16.msra.mxu0 %v1957_v35 }
  0xcc   :  { %1289 = vmatprep.subr.bf16.mxu0 %v1962_v36 }
  0xcf   :  { %1290 = vmatpush1.bf16.msra.mxu0 %v1960_v37 }
  0xd0   :  { %1291 = vmatprep.subr.bf16.mxu0 %v1965_v38 }
  0xd3   :  { %1292 = vmatpush1.bf16.msra.mxu0 %v1963_v39 }
  0xd4   :  { %1293 = vmatprep.subr.bf16.mxu0 %v1968_v40 }
  0xd7   :  { %1294 = vmatpush2.bf16.msra.mxu0 %v1966_v41 }
  0xd8   :  { %1295 = vmatprep.subr.bf16.mxu0 %v1971_v42 }
  0xdb   :  { %1296 = vmatpush2.bf16.msra.mxu0 %v1969_v43 }
  0xdc   :  { %1297 = vmatprep.subr.bf16.mxu0 %v1974_v44 }
  0xdf   :  { %1298 = vmatpush2.bf16.msra.mxu0 %v1972_v45 }
  0xe0   :  { %1299 = vmatprep.subr.bf16.mxu0 %v1977_v46 }
  0xe3   :  { %1300 = vmatpush2.bf16.msra.mxu0 %v1975_v47 }
  0xe4   :  { %1301 = vmatprep.subr.bf16.mxu0 %v1980_v48 }
  0xe7   :  { %1302 = vmatpush2.bf16.msra.mxu0 %v1978_v49 }
  0xe8   :  { %1303 = vmatprep.subr.bf16.mxu0 %v1983_v50  ;;  %v1999_v50 = vld [vmem:[#allocation8 + $0x18] sm:$0xff]  }
  0xe9   :  { %1727 = vmatpush3.bf16.msra.mxu1 %v1999_v50 }
  0xeb   :  { %1304 = vmatpush2.bf16.msra.mxu0 %v1981_v51  ;;  %v2000_v51 = vld [vmem:[#allocation8 + $0x50] sm:$0xff]  }
  0xec   :  { %1305 = vmatprep.subr.bf16.mxu0 %v1986_v52  ;;  %v2001_v52 = vld [vmem:[#allocation8 + $0x10] sm:$0xff]   ;;  %1728 = vmatprep.subr.bf16.mxu1 %v2000_v51 }
  0xed   :  { %1729 = vmatpush3.bf16.msra.mxu1 %v2001_v52 }
  0xef   :  { %1306 = vmatpush2.bf16.msra.mxu0 %v1984_v53  ;;  %v2002_v53 = vld [vmem:[#allocation8 + $0x48] sm:$0xff]  }
  0xf0   :  { %1307 = vmatprep.subr.bf16.mxu0 %v1989_v55  ;;  %1730 = vmatprep.subr.bf16.mxu1 %v2002_v53  ;;  %v2004_v55 = vld [vmem:[#allocation8 + $0x40] sm:$0xff]  }
  0xf3   :  { %1308 = vmatpush2.bf16.msra.mxu0 %v1987_v54  ;;  %v2003_v54 = vld [vmem:[#allocation8 + $0x8] sm:$0xff]  }
  0xf4   :  { %1731 = vmatpush3.bf16.msra.mxu1 %v2003_v54 }
  0xf5   :  { %1732 = vmatprep.subr.bf16.mxu1 %v2004_v55 }
  0xf8   :  { %1733 = vmatpush3.bf16.msra.mxu1 %v2005_v56 }
 0x136   :  { %v921_v3 = vpop.f32.mrf.mxu0 }
 0x137   :  { %v964_v4 = vpop.f32.mrf.mxu1  ;;  %v922_v14 = vadd.f32 %v921_v3, %v240_v10 }
 0x138   :  { %v923_v8 = vpop.f32.mrf.mxu0 }
 0x139   :  { %v966_v9 = vpop.f32.mrf.mxu1  ;;  %v924_v15 = vadd.f32 %v923_v8, %v244_v11  ;;  %v965_v21 = vadd.f32 %v964_v4, %v922_v14 }
 0x13a   :  { %v925_v12 = vpop.f32.mrf.mxu0 }
 0x13b   :  { %v968_v13 = vpop.f32.mrf.mxu1  ;;  %v926_v18 = vadd.f32 %v925_v12, %v240_v10  ;;  %v967_v22 = vadd.f32 %v966_v9, %v924_v15  ;;  %v1701_v15 = vld [vmem:[%s2223_s6] ss:$0 sm:$0xff]  ;;  %s2131_s6 = smov [#allocation10]  }
 0x13c   :  { %v927_v16 = vpop.f32.mrf.mxu0  ;;  %s1527_s26 = sshll.u32 %s2131_s6, 4  ;;  %s1528_s26 = int_to_ptr.vmem [resolvable:$true] %s1527_s26 }
 0x13d   :  { %v970_v17 = vpop.f32.mrf.mxu1  ;;  %v928_v23 = vadd.f32 %v927_v16, %v244_v11  ;;  %v969_v26 = vadd.f32 %v968_v13, %v926_v18  ;;  %s2094_s29 = scalar_lea.vmem %s1528_s26, 256  ;;  %p2099_p7 = scmp.lt.s32.totalorder %s1528_s26, %s1528_s26 }
 0x13e   :  { %p2095_p6 = scmp.ne.s32.totalorder %s1528_s26, %s2094_s29  ;;  %p2100_p8 = scmp.lt.s32.totalorder %s2094_s29, %s2094_s29 }
 0x13f   :  { %v971_v32 = vadd.f32 %v970_v17, %v928_v23 }
 0x140   :  { %p2101_p9 = por %p2100_p8, %p2099_p7 }
 0x142   :  { %p2102_p10 = pnand %p2101_p9, %p2095_p6 }
 0x176   :  { %v1007_v19 = vpop.f32.mrf.mxu0 }
 0x177   :  { %v1050_v20 = vpop.f32.mrf.mxu1  ;;  %v1008_v27 = vadd.f32 %v1007_v19, %v965_v21 }
 0x178   :  { %v1009_v24 = vpop.f32.mrf.mxu0 }
 0x179   :  { %v1052_v25 = vpop.f32.mrf.mxu1  ;;  %v1010_v28 = vadd.f32 %v1009_v24, %v967_v22  ;;  %v1051_v35 = vadd.f32 %v1050_v20, %v1008_v27 }
 0x17a   :  { %v1011_v29 = vpop.f32.mrf.mxu0 }
 0x17b   :  { %v1012_v30 = vadd.f32 %v1011_v29, %v969_v26  ;;  %v1054_v31 = vpop.f32.mrf.mxu1  ;;  %v1053_v33 = vadd.f32 %v1052_v25, %v1010_v28  ;;  %v1063_v42 = vmul.f32 0.2, %v1051_v35  ;;  %vm1059_vm2 = vcmp.gt.f32.partialorder %v1051_v35, 0.0 }
 0x17c   :  { %v1013_v34 = vpop.f32.mrf.mxu0 }
 0x17d   :  { %v1055_v36 = vadd.f32 %v1054_v31, %v1012_v30  ;;  %v1014_v37 = vadd.f32 %v1013_v34, %v971_v32  ;;  %v1056_v39 = vpop.f32.mrf.mxu1  ;;  %v1064_v40 = vmul.f32 0.2, %v1053_v33  ;;  %vm1060_vm1 = vcmp.gt.f32.partialorder %v1053_v33, 0.0 }
 0x17e   :  { %v1067_v47 = vsel %vm1059_vm2, %v1051_v35, %v1063_v42 }
 0x17f   :  { %v1065_v38 = vmul.f32 0.2, %v1055_v36  ;;  %vm1061_vm0 = vcmp.gt.f32.partialorder %v1055_v36, 0.0  ;;  %v1057_v41 = vadd.f32 %v1056_v39, %v1014_v37  ;;  %v1068_v45 = vsel %vm1060_vm1, %v1053_v33, %v1064_v40 }
 0x181   :  { %vm1062_vm3 = vcmp.gt.f32.partialorder %v1057_v41, 0.0  ;;  %v1066_v43 = vmul.f32 0.2, %v1057_v41  ;;  %v1069_v44 = vsel %vm1061_vm0, %v1055_v36, %v1065_v38 }
 0x182   :  { %v1071_v49 = vpack.c.bf16 %v1069_v44, %v1067_v47 }
 0x183   :  { %v1070_v46 = vsel %vm1062_vm3, %v1057_v41, %v1066_v43 }
 0x184   :  { %v1072_v48 = vpack.c.bf16 %v1070_v46, %v1068_v45 }
 0x186   :  { %1309 = vmatprep.mubr.bf16.mxu0 %v1072_v48 }
 0x187   :  { %1310 = vmatmul.mubr.bf16.vlgmr.msra.gmra.mxu0 %v1071_v49 }
 0x247   :  { %v1311_v60 = vpop.f32.mrf.mxu0 }
 0x248   :  { %v1312_v63 = vadd.f32 %v1311_v60, %v1110_v59 }
 0x249   :  { %v1313_v61 = vpop.f32.mrf.mxu0 }
 0x24a   :  { %v1314_v62 = vadd.f32 %v1313_v61, %v1114_v58  ;;  %v1324_v9 = vmul.f32 0.2, %v1312_v63  ;;  %vm1320_vm6 = vcmp.gt.f32.partialorder %v1312_v63, 0.0 }
 0x24b   :  { %v1315_v0 = vpop.f32.mrf.mxu0 }
 0x24c   :  { %v1316_v1 = vadd.f32 %v1315_v0, %v1110_v59  ;;  %v1325_v4 = vmul.f32 0.2, %v1314_v62  ;;  %vm1321_vm5 = vcmp.gt.f32.partialorder %v1314_v62, 0.0  ;;  %v1328_v5 = vsel %vm1320_vm6, %v1312_v63, %v1324_v9 }
 0x24d   :  { %v1317_v3 = vpop.f32.mrf.mxu0 }
 0x24e   :  { %vm1322_vm4 = vcmp.gt.f32.partialorder %v1316_v1, 0.0  ;;  %v1326_v7 = vmul.f32 0.2, %v1316_v1  ;;  %v1318_v8 = vadd.f32 %v1317_v3, %v1114_v58  ;;  %v1329_v11 = vsel %vm1321_vm5, %v1314_v62, %v1325_v4 }
 0x250   :  { %vm1323_vm7 = vcmp.gt.f32.partialorder %v1318_v8, 0.0  ;;  %v1327_v10 = vmul.f32 0.2, %v1318_v8  ;;  %v1330_v6 = vsel %vm1322_vm4, %v1316_v1, %v1326_v7 }
 0x251   :  { %v1332_v13 = vpack.c.bf16 %v1330_v6, %v1328_v5 }
 0x252   :  { %v1331_v2 = vsel %vm1323_vm7, %v1318_v8, %v1327_v10 }
 0x253   :  { %v1333_v12 = vpack.c.bf16 %v1331_v2, %v1329_v11 }
 0x255   :  { %1501 = vmatprep.mubr.bf16.mxu1 %v1333_v12 }
 0x256   :  { %1502 = vmatmul.mubr.bf16.vlgmr.msra.gmra.mxu1 %v1332_v13 }
 0x316   :  { %v1734_v14 = vpop.f32.mrf.mxu1 }
 0x318   :  { %v1735_v16 = vpop.f32.mrf.mxu1 }
 0x319   :  { %v1736_v17 = vadd.f32 %v1735_v16, %v1734_v14 }
 0x31a   :  { %v1737_v18 = vpop.f32.mrf.mxu1 }
 0x31b   :  { %v1504_v19 = vadd.f32 %v1736_v17, %v1701_v15 }
 0x31c   :  { %v1738_v20 = vpop.f32.mrf.mxu1 }
 0x31d   :  { %v1510_v21 = vsub.f32 0.0, %v1504_v19  ;;  %v1739_v22 = vadd.f32 %v1738_v20, %v1737_v18 }
 0x31f   :  { %v1512_v23 = vmul.f32 1.442695, %v1510_v21  ;;  %v1507_v24 = vadd.f32 %v1739_v22, %v1701_v15 }
 0x321   :  { %2006 = vpow2.f32 %v1512_v23  ;;  %v1511_v25 = vsub.f32 0.0, %v1507_v24 }
 0x323   :  { %v1514_v26 = vmul.f32 1.442695, %v1511_v25 }
 0x325   :  { %2008 = vpow2.f32 %v1514_v26 }
 0x32e   :  { %v2007_v27 = vpop.eup %2006 }
 0x32f   :  { %v1516_v28 = vadd.f32 1.0, %v2007_v27 }
 0x331   :  { %2010 = vrcp.f32 %v1516_v28 }
 0x332   :  { %v2009_v29 = vpop.eup %2008 }
 0x333   :  { %v1517_v30 = vadd.f32 1.0, %v2009_v29 }
 0x335   :  { %2012 = vrcp.f32 %v1517_v30 }
 0x33e   :  { %v2011_v31 = vpop.eup %2010 }
 0x33f   :  { %1520 = vst [vmem:[#allocation10] sm:$0xff] %v2011_v31 }
 0x342   :  { %v2013_v32 = vpop.eup %2012 }
 0x343   :  { %1521 = vst [vmem:[#allocation10 + $0x8] sm:$0xff] %v2013_v32 }
 0x344   :  { %2105 = shalt.err (!%p2102_p10)
}
 0x345   :  { %1533 = dma.vmem_to_hbm [thread:$0]  %s1528_s26, 256, %s2224_s7, [#allocation4], %s2123_s27, %s2123_s27, %s2124_s28  }
 0x346   :  { %2120 = dma.done.wait [#allocation4], 256  }
 0x347   :  { %2121 = vsyncadd [#allocation4], 4294967040 }
 0x348   :  { %1537 = vsyncpa [#allocation3], 1 }
 0x349   :  { %1538 = vsyncpa [#allocation6], 1 }
 0x34a   :  { %1539 = vsyncpa [#allocation9], 1 }
 0x34b   :  { %1540 = vsyncpa [#allocation4], 1 }

// kernel: tpu_custom_call.1
= control target key start
LH: loop header
LB: loop body
LE: loop exit
PB: predicated region body
PF: predicated region fallthrough
CT: control target
= control target key end

     0   :  { %12 = vsyncpa [#allocation3], 0  ;;  %s2217_s0 = inlined_call_operand.hbm [shape: f32[16,1024], index: 0, kind: input, shape index: {}]   ;;  %s2218_s1 = inlined_call_operand.hbm [shape: bf16[1024,256], index: 1, kind: input, shape index: {}]   ;;  %s2219_s2 = inlined_call_operand.vmem [shape: f32[1,256], index: 2, kind: input, shape index: {}]   ;;  %s2220_s3 = inlined_call_operand.hbm [shape: bf16[256,256], index: 3, kind: input, shape index: {}]   ;;  %s2221_s4 = inlined_call_operand.vmem [shape: f32[1,256], index: 4, kind: input, shape index: {}]   ;;  %s2222_s5 = inlined_call_operand.hbm [shape: bf16[256,128], index: 5, kind: input, shape index: {}]   ;;  %s2223_s6 = inlined_call_operand.vmem [shape: f32[1,128], index: 6, kind: input, shape index: {}]   ;;  %s2224_s7 = inlined_call_operand.hbm [shape: f32[16,128], index: 7, kind: output, shape index: {}]  }
   0x1   :  { %13 = vsyncpa [#allocation6], 0 }
   0x2   :  { %14 = vsyncpa [#allocation9], 0 }
   0x3   :  { %15 = vsyncpa [#allocation4], 0  ;;  %s2122_s24 = smov [#allocation5]  }
   0x4   :  { %s33_s25 = sshll.u32 %s2122_s24, 4  ;;  %s34_s25 = int_to_ptr.vmem [resolvable:$true] %s33_s25 }
   0x5   :  { %s2022_s26 = scalar_lea.vmem %s34_s25, 16384  ;;  %p2027_p1 = scmp.lt.s32.totalorder %s34_s25, %s34_s25 }
   0x6   :  { %p2023_p0 = scmp.ne.s32.totalorder %s34_s25, %s2022_s26  ;;  %p2028_p2 = scmp.lt.s32.totalorder %s2022_s26, %s2022_s26 }
   0x8   :  { %p2029_p3 = por %p2028_p2, %p2027_p1 }
   0xa   :  { %p2030_p4 = pnand %p2029_p3, %p2023_p0 }
   0xc   :  { %2033 = shalt.err (!%p2030_p4)
}
   0xd   :  { %s2123_s27 = smov 128   ;;  %s2124_s28 = smov 8  }
   0xe   :  { %39 = dma.hbm_to_vmem [thread:$0]  %s2218_s1, 16384, %s34_s25, [#allocation6], %s2123_s27, %s2123_s27, %s2124_s28  }
   0xf   :  { %s2125_s8 = smov [#allocation2]  }
  0x10   :  { %s21_s9 = sshll.u32 %s2125_s8, 4  ;;  %s22_s9 = int_to_ptr.vmem [resolvable:$true] %s21_s9 }
  0x11   :  { %s2042_s10 = scalar_lea.vmem %s22_s9, 2048  ;;  %p2047_p6 = scmp.lt.s32.totalorder %s22_s9, %s22_s9 }
  0x12   :  { %p2043_p5 = scmp.ne.s32.totalorder %s22_s9, %s2042_s10  ;;  %p2048_p7 = scmp.lt.s32.totalorder %s2042_s10, %s2042_s10 }
  0x14   :  { %p2049_p8 = por %p2048_p7, %p2047_p6 }
  0x16   :  { %p2050_p9 = pnand %p2049_p8, %p2043_p5 }
  0x18   :  { %2053 = shalt.err (!%p2050_p9)
}
  0x19   :  { %s2126_s11 = smov 1024   ;;  %s2127_s12 = smov 64  }
  0x1a   :  { %27 = dma.hbm_to_vmem [thread:$0]  %s2217_s0, 2048, %s22_s9, [#allocation3], %s2126_s11, %s2126_s11, %s2127_s12  }
  0x1b   :  { %s2128_s15 = smov [#allocation7]   ;;  %s2129_s17 = smov [#allocation8]  }
  0x1c   :  { %s47_s16 = sshll.u32 %s2128_s15, 4  ;;  %s61_s1 = sshll.u32 %s2129_s17, 4  ;;  %s48_s16 = int_to_ptr.vmem [resolvable:$true] %s47_s16  ;;  %s62_s1 = int_to_ptr.vmem [resolvable:$true] %s61_s1 }
  0x1d   :  { %s2062_s18 = scalar_lea.vmem %s48_s16, 4096  ;;  %p2067_p11 = scmp.lt.s32.totalorder %s48_s16, %s48_s16 }
  0x1e   :  { %p2063_p10 = scmp.ne.s32.totalorder %s48_s16, %s2062_s18  ;;  %p2068_p12 = scmp.lt.s32.totalorder %s2062_s18, %s2062_s18 }
  0x20   :  { %p2069_p13 = por %p2068_p12, %p2067_p11 }
  0x22   :  { %p2070_p0 = pnand %p2069_p13, %p2063_p10 }
  0x24   :  { %2073 = shalt.err (!%p2070_p0)
}
  0x25   :  { %53 = dma.hbm_to_vmem [thread:$0]  %s2220_s3, 4096, %s48_s16, [#allocation6], %s2123_s27, %s2123_s27, %s2124_s28  }
  0x26   :  { %s2082_s0 = scalar_lea.vmem %s62_s1, 2048  ;;  %p2087_p2 = scmp.lt.s32.totalorder %s62_s1, %s62_s1 }
  0x27   :  { %p2083_p1 = scmp.ne.s32.totalorder %s62_s1, %s2082_s0  ;;  %p2088_p3 = scmp.lt.s32.totalorder %s2082_s0, %s2082_s0 }
  0x29   :  { %p2089_p4 = por %p2088_p3, %p2087_p2 }
  0x2b   :  { %p2090_p5 = pnand %p2089_p4, %p2083_p1 }
  0x2d   :  { %2093 = shalt.err (!%p2090_p5)
}
  0x2e   :  { %s2130_s21 = smov 4  }
  0x2f   :  { %67 = dma.hbm_to_vmem [thread:$0]  %s2222_s5, 2048, %s62_s1, [#allocation9], %s2127_s12, %s2127_s12, %s2130_s21  }
  0x30   :  { %2114 = dma.done.wait [#allocation3], 2048  }
  0x31   :  { %2115 = vsyncadd [#allocation3], 4294965248 }
  0x32   :  { %2116 = dma.done.wait [#allocation6], 20480  }
  0x33   :  { %2117 = vsyncadd [#allocation6], 4294946816 }
  0x34   :  { %2118 = dma.done.wait [#allocation9], 2048  }
  0x35   :  { %2119 = vsyncadd [#allocation9], 4294965248  ;;  %v1750_v0 = vld [vmem:[#allocation5 + $0x74] ss:$8 sps:$4 sm:$0xff]   ;;  %v1754_v2 = vld [vmem:[#allocation5 + $0x70] ss:$8 sps:$4 sm:$0xff]  }
  0x36   :  { %v1752_v1 = vld [vmem:[#allocation5 + $0x174] ss:$8 sps:$4 sm:$0xff]   ;;  %887 = vmatprep.subr.bf16.mxu0 %v1750_v0  ;;  %v1755_v3 = vld [vmem:[#allocation5 + $0x170] ss:$8 sps:$4 sm:$0xff]   ;;  %v1756_v4 = vld [vmem:[#allocation5 + $0x64] ss:$8 sps:$4 sm:$0xff]  }
  0x37   :  { %930 = vmatprep.subr.bf16.mxu1 %v1752_v1  ;;  %888 = vmatpush1.bf16.msra.mxu0 %v1754_v2  ;;  %v1758_v5 = vld [vmem:[#allocation5 + $0x164] ss:$8 sps:$4 sm:$0xff]   ;;  %v1760_v6 = vld [vmem:[#allocation5 + $0x60] ss:$8 sps:$4 sm:$0xff]   ;;  %v1762_v8 = vld [vmem:[#allocation5 + $0x54] ss:$8 sps:$4 sm:$0xff]  }
  0x38   :  { %931 = vmatpush1.bf16.msra.mxu1 %v1755_v3  ;;  %889 = vmatprep.subr.bf16.mxu0 %v1756_v4  ;;  %v1761_v7 = vld [vmem:[#allocation5 + $0x160] ss:$8 sps:$4 sm:$0xff]   ;;  %v1764_v9 = vld [vmem:[#allocation5 + $0x154] ss:$8 sps:$4 sm:$0xff]   ;;  %v1766_v10 = vld [vmem:[#allocation5 + $0x50] ss:$8 sps:$4 sm:$0xff]  }
  0x39   :  { %932 = vmatprep.subr.bf16.mxu1 %v1758_v5  ;;  %v1767_v11 = vld [vmem:[#allocation5 + $0x150] ss:$8 sps:$4 sm:$0xff]   ;;  %v1768_v12 = vld [vmem:[#allocation5 + $0x44] ss:$8 sps:$4 sm:$0xff]   ;;  %v1772_v14 = vld [vmem:[#allocation5 + $0x40] ss:$8 sps:$4 sm:$0xff]  }
  0x3a   :  { %v1770_v13 = vld [vmem:[#allocation5 + $0x144] ss:$8 sps:$4 sm:$0xff]   ;;  %v1773_v15 = vld [vmem:[#allocation5 + $0x140] ss:$8 sps:$4 sm:$0xff]   ;;  %v1774_v16 = vld [vmem:[#allocation5 + $0x34] ss:$8 sps:$4 sm:$0xff]  }
  0x3b   :  { %890 = vmatpush1.bf16.msra.mxu0 %v1760_v6  ;;  %v1776_v17 = vld [vmem:[#allocation5 + $0x134] ss:$8 sps:$4 sm:$0xff]   ;;  %v1778_v18 = vld [vmem:[#allocation5 + $0x30] ss:$8 sps:$4 sm:$0xff]   ;;  %v1780_v20 = vld [vmem:[#allocation5 + $0x24] ss:$8 sps:$4 sm:$0xff]  }
  0x3c   :  { %933 = vmatpush1.bf16.msra.mxu1 %v1761_v7  ;;  %891 = vmatprep.subr.bf16.mxu0 %v1762_v8  ;;  %v1779_v19 = vld [vmem:[#allocation5 + $0x130] ss:$8 sps:$4 sm:$0xff]   ;;  %v1782_v21 = vld [vmem:[#allocation5 + $0x124] ss:$8 sps:$4 sm:$0xff]   ;;  %v1784_v22 = vld [vmem:[#allocation5 + $0x20] ss:$8 sps:$4 sm:$0xff]  }
  0x3d   :  { %934 = vmatprep.subr.bf16.mxu1 %v1764_v9  ;;  %v1785_v23 = vld [vmem:[#allocation5 + $0x120] ss:$8 sps:$4 sm:$0xff]   ;;  %v1786_v24 = vld [vmem:[#allocation5 + $0x14] ss:$8 sps:$4 sm:$0xff]   ;;  %v1790_v26 = vld [vmem:[#allocation5 + $0x10] ss:$8 sps:$4 sm:$0xff]  }
  0x3e   :  { %v1788_v25 = vld [vmem:[#allocation5 + $0x114] ss:$8 sps:$4 sm:$0xff]   ;;  %v1791_v27 = vld [vmem:[#allocation5 + $0x110] ss:$8 sps:$4 sm:$0xff]   ;;  %v1792_v28 = vld [vmem:[#allocation5 + $0x4] ss:$8 sps:$4 sm:$0xff]  }
  0x3f   :  { %892 = vmatpush1.bf16.msra.mxu0 %v1766_v10  ;;  %v1794_v29 = vld [vmem:[#allocation5 + $0x104] ss:$8 sps:$4 sm:$0xff]   ;;  %v1796_v30 = vld [vmem:[#allocation5] ss:$8 sps:$4 sm:$0xff]   ;;  %v1798_v32 = vld [vmem:[#allocation5 + $0xf4] ss:$8 sps:$4 sm:$0xff]  }
  0x40   :  { %935 = vmatpush1.bf16.msra.mxu1 %v1767_v11  ;;  %893 = vmatprep.subr.bf16.mxu0 %v1768_v12  ;;  %v1797_v31 = vld [vmem:[#allocation5 + $0x100] ss:$8 sps:$4 sm:$0xff]   ;;  %v1800_v33 = vld [vmem:[#allocation5 + $0x1f4] ss:$8 sps:$4 sm:$0xff]   ;;  %v1802_v34 = vld [vmem:[#allocation5 + $0xf0] ss:$8 sps:$4 sm:$0xff]  }
  0x41   :  { %936 = vmatprep.subr.bf16.mxu1 %v1770_v13  ;;  %v1803_v35 = vld [vmem:[#allocation5 + $0x1f0] ss:$8 sps:$4 sm:$0xff]   ;;  %v1804_v36 = vld [vmem:[#allocation5 + $0xe4] ss:$8 sps:$4 sm:$0xff]   ;;  %v1808_v38 = vld [vmem:[#allocation5 + $0xe0] ss:$8 sps:$4 sm:$0xff]  }
  0x42   :  { %v1806_v37 = vld [vmem:[#allocation5 + $0x1e4] ss:$8 sps:$4 sm:$0xff]   ;;  %v1809_v39 = vld [vmem:[#allocation5 + $0x1e0] ss:$8 sps:$4 sm:$0xff]   ;;  %v1810_v40 = vld [vmem:[#allocation5 + $0xd4] ss:$8 sps:$4 sm:$0xff]  }
  0x43   :  { %894 = vmatpush1.bf16.msra.mxu0 %v1772_v14  ;;  %v1812_v41 = vld [vmem:[#allocation5 + $0x1d4] ss:$8 sps:$4 sm:$0xff]   ;;  %v1814_v42 = vld [vmem:[#allocation5 + $0xd0] ss:$8 sps:$4 sm:$0xff]   ;;  %v1816_v44 = vld [vmem:[#allocation5 + $0xc4] ss:$8 sps:$4 sm:$0xff]  }
  0x44   :  { %937 = vmatpush1.bf16.msra.mxu1 %v1773_v15  ;;  %895 = vmatprep.subr.bf16.mxu0 %v1774_v16  ;;  %v1815_v43 = vld [vmem:[#allocation5 + $0x1d0] ss:$8 sps:$4 sm:$0xff]   ;;  %v1818_v45 = vld [vmem:[#allocation5 + $0x1c4] ss:$8 sps:$4 sm:$0xff]   ;;  %v1820_v50 = vld [vmem:[#allocation5 + $0xc0] ss:$8 sps:$4 sm:$0xff]  }
  0x45   :  { %938 = vmatprep.subr.bf16.mxu1 %v1776_v17  ;;  %v84_v46 = vld [vmem:[#allocation2 + $0x8] sm:$0xff]  ;;  %v86_v48 = vld [vmem:[#allocation2 + $0x18] sm:$0xff]  ;;  %v83_v6 = vld [vmem:[#allocation2] sm:$0xff] }
  0x46   :  { %v92_v47 = vld [vmem:[#allocation2 + $0x48] sm:$0xff]  ;;  %v94_v49 = vld [vmem:[#allocation2 + $0x58] sm:$0xff]  ;;  %v91_v7 = vld [vmem:[#allocation2 + $0x40] sm:$0xff] }
  0x47   :  { %896 = vmatpush1.bf16.msra.mxu0 %v1778_v18  ;;  %v1821_v51 = vld [vmem:[#allocation5 + $0x1c0] ss:$8 sps:$4 sm:$0xff]   ;;  %v1822_v52 = vld [vmem:[#allocation5 + $0xb4] ss:$8 sps:$4 sm:$0xff]   ;;  %v100_v53 = vpack.c.bf16 %v92_v47, %v84_v46  ;;  %v102_v54 = vpack.c.bf16 %v94_v49, %v86_v48  ;;  %v1826_v56 = vld [vmem:[#allocation5 + $0xb0] ss:$8 sps:$4 sm:$0xff]   ;;  %v99_v12 = vpack.c.bf16 %v91_v7, %v83_v6 }
  0x48   :  { %939 = vmatpush1.bf16.msra.mxu1 %v1779_v19  ;;  %897 = vmatprep.subr.bf16.mxu0 %v1780_v20  ;;  %v1824_v55 = vld [vmem:[#allocation5 + $0x1b4] ss:$8 sps:$4 sm:$0xff]   ;;  %v1827_v57 = vld [vmem:[#allocation5 + $0x1b0] ss:$8 sps:$4 sm:$0xff]   ;;  %v1828_v58 = vld [vmem:[#allocation5 + $0xa4] ss:$8 sps:$4 sm:$0xff]  }
  0x49   :  { %940 = vmatprep.subr.bf16.mxu1 %v1782_v21  ;;  %919 = vmatprep.mubr.bf16.mxu0 %v100_v53  ;;  %v1830_v59 = vld [vmem:[#allocation5 + $0x1a4] ss:$8 sps:$4 sm:$0xff]   ;;  %v1832_v60 = vld [vmem:[#allocation5 + $0xa0] ss:$8 sps:$4 sm:$0xff]   ;;  %v1834_v62 = vld [vmem:[#allocation5 + $0x94] ss:$8 sps:$4 sm:$0xff]  }
  0x4a   :  { %962 = vmatprep.mubr.bf16.mxu1 %v102_v54  ;;  %v1833_v61 = vld [vmem:[#allocation5 + $0x1a0] ss:$8 sps:$4 sm:$0xff]   ;;  %v1836_v63 = vld [vmem:[#allocation5 + $0x194] ss:$8 sps:$4 sm:$0xff]   ;;  %v1838_v0 = vld [vmem:[#allocation5 + $0x90] ss:$8 sps:$4 sm:$0xff]  }
  0x4b   :  { %898 = vmatpush1.bf16.msra.mxu0 %v1784_v22  ;;  %v1839_v1 = vld [vmem:[#allocation5 + $0x190] ss:$8 sps:$4 sm:$0xff]   ;;  %v1840_v2 = vld [vmem:[#allocation5 + $0x84] ss:$8 sps:$4 sm:$0xff]   ;;  %v1844_v4 = vld [vmem:[#allocation5 + $0x80] ss:$8 sps:$4 sm:$0xff]  }
  0x4c   :  { %941 = vmatpush1.bf16.msra.mxu1 %v1785_v23  ;;  %899 = vmatprep.subr.bf16.mxu0 %v1786_v24  ;;  %v1842_v3 = vld [vmem:[#allocation5 + $0x184] ss:$8 sps:$4 sm:$0xff]   ;;  %v1845_v5 = vld [vmem:[#allocation5 + $0x180] ss:$8 sps:$4 sm:$0xff]   ;;  %v85_v8 = vld [vmem:[#allocation2 + $0x10] sm:$0xff] }
  0x4d   :  { %942 = vmatprep.subr.bf16.mxu1 %v1788_v25  ;;  %v93_v9 = vld [vmem:[#allocation2 + $0x50] sm:$0xff]  ;;  %v1854_v16 = vld [vmem:[#allocation5 + $0x264] ss:$8 sps:$4 sm:$0xff]   ;;  %v1852_v18 = vld [vmem:[#allocation5 + $0x260] ss:$8 sps:$4 sm:$0xff]  }
  0x4e   :  { %v1848_v10 = vld [vmem:[#allocation5 + $0x274] ss:$8 sps:$4 sm:$0xff]   ;;  %v101_v13 = vpack.c.bf16 %v93_v9, %v85_v8  ;;  %v1846_v14 = vld [vmem:[#allocation5 + $0x270] ss:$8 sps:$4 sm:$0xff]   ;;  %v1857_v17 = vld [vmem:[#allocation5 + $0x364] ss:$8 sps:$4 sm:$0xff]  }
  0x4f   :  { %900 = vmatpush1.bf16.msra.mxu0 %v1790_v26  ;;  %v1851_v11 = vld [vmem:[#allocation5 + $0x374] ss:$8 sps:$4 sm:$0xff]   ;;  %v1849_v15 = vld [vmem:[#allocation5 + $0x370] ss:$8 sps:$4 sm:$0xff]   ;;  %v1855_v19 = vld [vmem:[#allocation5 + $0x360] ss:$8 sps:$4 sm:$0xff]  }
  0x50   :  { %943 = vmatpush1.bf16.msra.mxu1 %v1791_v27  ;;  %901 = vmatprep.subr.bf16.mxu0 %v1792_v28  ;;  %v1860_v20 = vld [vmem:[#allocation5 + $0x254] ss:$8 sps:$4 sm:$0xff]   ;;  %v1858_v22 = vld [vmem:[#allocation5 + $0x250] ss:$8 sps:$4 sm:$0xff]   ;;  %v1866_v24 = vld [vmem:[#allocation5 + $0x244] ss:$8 sps:$4 sm:$0xff]  }
  0x51   :  { %944 = vmatprep.subr.bf16.mxu1 %v1794_v29  ;;  %v1863_v21 = vld [vmem:[#allocation5 + $0x354] ss:$8 sps:$4 sm:$0xff]   ;;  %v1861_v23 = vld [vmem:[#allocation5 + $0x350] ss:$8 sps:$4 sm:$0xff]   ;;  %v1869_v25 = vld [vmem:[#allocation5 + $0x344] ss:$8 sps:$4 sm:$0xff]  }
  0x52   :  { %v1864_v26 = vld [vmem:[#allocation5 + $0x240] ss:$8 sps:$4 sm:$0xff]   ;;  %v1872_v28 = vld [vmem:[#allocation5 + $0x234] ss:$8 sps:$4 sm:$0xff]   ;;  %v1897_v53 = vld [vmem:[#allocation5 + $0x3f0] ss:$8 sps:$4 sm:$0xff]  }
  0x53   :  { %902 = vmatpush1.bf16.msra.mxu0 %v1796_v30  ;;  %v1867_v27 = vld [vmem:[#allocation5 + $0x340] ss:$8 sps:$4 sm:$0xff]   ;;  %v1875_v29 = vld [vmem:[#allocation5 + $0x334] ss:$8 sps:$4 sm:$0xff]   ;;  %v1870_v30 = vld [vmem:[#allocation5 + $0x230] ss:$8 sps:$4 sm:$0xff]  }
  0x54   :  { %945 = vmatpush1.bf16.msra.mxu1 %v1797_v31  ;;  %903 = vmatprep.subr.bf16.mxu0 %v1798_v32  ;;  %v1873_v31 = vld [vmem:[#allocation5 + $0x330] ss:$8 sps:$4 sm:$0xff]   ;;  %v1878_v32 = vld [vmem:[#allocation5 + $0x224] ss:$8 sps:$4 sm:$0xff]   ;;  %v1888_v47 = vld [vmem:[#allocation5 + $0x200] ss:$8 sps:$4 sm:$0xff]  }
  0x55   :  { %946 = vmatprep.subr.bf16.mxu1 %v1800_v33  ;;  %v1881_v33 = vld [vmem:[#allocation5 + $0x324] ss:$8 sps:$4 sm:$0xff]   ;;  %v98_v46 = vld [vmem:[#allocation2 + $0x78] sm:$0xff]  ;;  %v1891_v48 = vld [vmem:[#allocation5 + $0x300] ss:$8 sps:$4 sm:$0xff]  }
  0x56   :  { %v1902_v54 = vld [vmem:[#allocation5 + $0x2e4] ss:$8 sps:$4 sm:$0xff]   ;;  %v1924_v8 = vld [vmem:[#allocation5 + $0x2a0] ss:$8 sps:$4 sm:$0xff]  }
  0x57   :  { %904 = vmatpush2.bf16.msra.mxu0 %v1802_v34  ;;  %v1876_v34 = vld [vmem:[#allocation5 + $0x220] ss:$8 sps:$4 sm:$0xff]   ;;  %v1926_v6 = vld [vmem:[#allocation5 + $0x2a4] ss:$8 sps:$4 sm:$0xff]  }
  0x58   :  { %947 = vmatpush2.bf16.msra.mxu1 %v1803_v35  ;;  %905 = vmatprep.subr.bf16.mxu0 %v1804_v36  ;;  %v1879_v35 = vld [vmem:[#allocation5 + $0x320] ss:$8 sps:$4 sm:$0xff]   ;;  %v1884_v36 = vld [vmem:[#allocation5 + $0x214] ss:$8 sps:$4 sm:$0xff]   ;;  %v1929_v7 = vld [vmem:[#allocation5 + $0x3a4] ss:$8 sps:$4 sm:$0xff]  }
  0x59   :  { %948 = vmatprep.subr.bf16.mxu1 %v1806_v37  ;;  %v1887_v37 = vld [vmem:[#allocation5 + $0x314] ss:$8 sps:$4 sm:$0xff]   ;;  %v1927_v9 = vld [vmem:[#allocation5 + $0x3a0] ss:$8 sps:$4 sm:$0xff]  }
  0x5b   :  { %906 = vmatpush2.bf16.msra.mxu0 %v1808_v38  ;;  %v1882_v38 = vld [vmem:[#allocation5 + $0x210] ss:$8 sps:$4 sm:$0xff]  }
  0x5c   :  { %949 = vmatpush2.bf16.msra.mxu1 %v1809_v39  ;;  %907 = vmatprep.subr.bf16.mxu0 %v1810_v40  ;;  %v1885_v39 = vld [vmem:[#allocation5 + $0x310] ss:$8 sps:$4 sm:$0xff]   ;;  %v88_v40 = vld [vmem:[#allocation2 + $0x28] sm:$0xff] }
  0x5d   :  { %950 = vmatprep.subr.bf16.mxu1 %v1812_v41  ;;  %v96_v41 = vld [vmem:[#allocation2 + $0x68] sm:$0xff] }
  0x5f   :  { %908 = vmatpush2.bf16.msra.mxu0 %v1814_v42  ;;  %v90_v42 = vld [vmem:[#allocation2 + $0x38] sm:$0xff] }
  0x60   :  { %951 = vmatpush2.bf16.msra.mxu1 %v1815_v43  ;;  %909 = vmatprep.subr.bf16.mxu0 %v1816_v44  ;;  %v1890_v43 = vld [vmem:[#allocation5 + $0x204] ss:$8 sps:$4 sm:$0xff]   ;;  %v106_v49 = vpack.c.bf16 %v98_v46, %v90_v42 }
  0x61   :  { %952 = vmatprep.subr.bf16.mxu1 %v1818_v45  ;;  %v1893_v44 = vld [vmem:[#allocation5 + $0x304] ss:$8 sps:$4 sm:$0xff]   ;;  %v104_v45 = vpack.c.bf16 %v96_v41, %v88_v40  ;;  %v1968_v40 = vld [vmem:[#allocation7 + $0xf4] ss:$8 sps:$4 sm:$0xff]   ;;  %v1966_v41 = vld [vmem:[#allocation7 + $0xf0] ss:$8 sps:$4 sm:$0xff]  }
  0x62   :  { %v1971_v42 = vld [vmem:[#allocation7 + $0xe4] ss:$8 sps:$4 sm:$0xff]  }
  0x63   :  { %910 = vmatpush2.bf16.msra.mxu0 %v1820_v50  ;;  %v1896_v50 = vld [vmem:[#allocation5 + $0x2f4] ss:$8 sps:$4 sm:$0xff]   ;;  %v1977_v46 = vld [vmem:[#allocation7 + $0xc4] ss:$8 sps:$4 sm:$0xff]  }
  0x64   :  { %953 = vmatpush2.bf16.msra.mxu1 %v1821_v51  ;;  %911 = vmatprep.subr.bf16.mxu0 %v1822_v52  ;;  %v1899_v51 = vld [vmem:[#allocation5 + $0x3f4] ss:$8 sps:$4 sm:$0xff]   ;;  %v1894_v52 = vld [vmem:[#allocation5 + $0x2f0] ss:$8 sps:$4 sm:$0xff]  }
  0x65   :  { %954 = vmatprep.subr.bf16.mxu1 %v1824_v55  ;;  %v1905_v55 = vld [vmem:[#allocation5 + $0x3e4] ss:$8 sps:$4 sm:$0xff]  }
  0x67   :  { %912 = vmatpush2.bf16.msra.mxu0 %v1826_v56  ;;  %v1900_v56 = vld [vmem:[#allocation5 + $0x2e0] ss:$8 sps:$4 sm:$0xff]  }
  0x68   :  { %955 = vmatpush2.bf16.msra.mxu1 %v1827_v57  ;;  %913 = vmatprep.subr.bf16.mxu0 %v1828_v58  ;;  %v1903_v57 = vld [vmem:[#allocation5 + $0x3e0] ss:$8 sps:$4 sm:$0xff]   ;;  %v1908_v58 = vld [vmem:[#allocation5 + $0x2d4] ss:$8 sps:$4 sm:$0xff]  }
  0x69   :  { %956 = vmatprep.subr.bf16.mxu1 %v1830_v59  ;;  %v1911_v59 = vld [vmem:[#allocation5 + $0x3d4] ss:$8 sps:$4 sm:$0xff]  }
  0x6b   :  { %914 = vmatpush2.bf16.msra.mxu0 %v1832_v60  ;;  %v1906_v60 = vld [vmem:[#allocation5 + $0x2d0] ss:$8 sps:$4 sm:$0xff]  }
  0x6c   :  { %957 = vmatpush2.bf16.msra.mxu1 %v1833_v61  ;;  %915 = vmatprep.subr.bf16.mxu0 %v1834_v62  ;;  %v1909_v61 = vld [vmem:[#allocation5 + $0x3d0] ss:$8 sps:$4 sm:$0xff]   ;;  %v1914_v62 = vld [vmem:[#allocation5 + $0x2c4] ss:$8 sps:$4 sm:$0xff]  }
  0x6d   :  { %958 = vmatprep.subr.bf16.mxu1 %v1836_v63  ;;  %v1917_v63 = vld [vmem:[#allocation5 + $0x3c4] ss:$8 sps:$4 sm:$0xff]  }
  0x6f   :  { %916 = vmatpush2.bf16.msra.mxu0 %v1838_v0  ;;  %v1912_v0 = vld [vmem:[#allocation5 + $0x2c0] ss:$8 sps:$4 sm:$0xff]  }
  0x70   :  { %959 = vmatpush2.bf16.msra.mxu1 %v1839_v1  ;;  %917 = vmatprep.subr.bf16.mxu0 %v1840_v2  ;;  %v1915_v1 = vld [vmem:[#allocation5 + $0x3c0] ss:$8 sps:$4 sm:$0xff]   ;;  %v1920_v2 = vld [vmem:[#allocation5 + $0x2b4] ss:$8 sps:$4 sm:$0xff]  }
  0x71   :  { %960 = vmatprep.subr.bf16.mxu1 %v1842_v3  ;;  %v1923_v3 = vld [vmem:[#allocation5 + $0x3b4] ss:$8 sps:$4 sm:$0xff]  }
  0x73   :  { %918 = vmatpush2.bf16.msra.mxu0 %v1844_v4  ;;  %v1918_v4 = vld [vmem:[#allocation5 + $0x2b0] ss:$8 sps:$4 sm:$0xff]  }
  0x74   :  { %961 = vmatpush2.bf16.msra.mxu1 %v1845_v5  ;;  %973 = vmatprep.subr.bf16.mxu0 %v1848_v10  ;;  %v1921_v5 = vld [vmem:[#allocation5 + $0x3b0] ss:$8 sps:$4 sm:$0xff]   ;;  %v1932_v10 = vld [vmem:[#allocation5 + $0x294] ss:$8 sps:$4 sm:$0xff]  }
  0x75   :  { %1016 = vmatprep.subr.bf16.mxu1 %v1851_v11  ;;  %v1935_v11 = vld [vmem:[#allocation5 + $0x394] ss:$8 sps:$4 sm:$0xff]  }
  0x76   :  { %920 = vmatmul.mubr.bf16.vlgmr.msra.gmra.mxu0 %v99_v12  ;;  %v1930_v12 = vld [vmem:[#allocation5 + $0x290] ss:$8 sps:$4 sm:$0xff]  }
  0x77   :  { %963 = vmatmul.mubr.bf16.vlgmr.msra.gmra.mxu1 %v101_v13  ;;  %974 = vmatpush1.bf16.msra.mxu0 %v1846_v14  ;;  %v1933_v13 = vld [vmem:[#allocation5 + $0x390] ss:$8 sps:$4 sm:$0xff]   ;;  %v1938_v14 = vld [vmem:[#allocation5 + $0x284] ss:$8 sps:$4 sm:$0xff]  }
  0x78   :  { %1017 = vmatpush1.bf16.msra.mxu1 %v1849_v15  ;;  %975 = vmatprep.subr.bf16.mxu0 %v1854_v16  ;;  %v1941_v15 = vld [vmem:[#allocation5 + $0x384] ss:$8 sps:$4 sm:$0xff]   ;;  %v1936_v16 = vld [vmem:[#allocation5 + $0x280] ss:$8 sps:$4 sm:$0xff]  }
  0x79   :  { %1018 = vmatprep.subr.bf16.mxu1 %v1857_v17  ;;  %1005 = vmatprep.mubr.bf16.mxu0 %v104_v45  ;;  %v1939_v17 = vld [vmem:[#allocation5 + $0x380] ss:$8 sps:$4 sm:$0xff]   ;;  %v1972_v45 = vld [vmem:[#allocation7 + $0xd0] ss:$8 sps:$4 sm:$0xff]  }
  0x7a   :  { %1048 = vmatprep.mubr.bf16.mxu1 %v106_v49  ;;  %v1978_v49 = vld [vmem:[#allocation7 + $0xb0] ss:$8 sps:$4 sm:$0xff]  }
  0x7b   :  { %976 = vmatpush1.bf16.msra.mxu0 %v1852_v18  ;;  %v87_v18 = vld [vmem:[#allocation2 + $0x20] sm:$0xff] }
  0x7c   :  { %1019 = vmatpush1.bf16.msra.mxu1 %v1855_v19  ;;  %977 = vmatprep.subr.bf16.mxu0 %v1860_v20  ;;  %v95_v19 = vld [vmem:[#allocation2 + $0x60] sm:$0xff]  ;;  %v89_v20 = vld [vmem:[#allocation2 + $0x30] sm:$0xff] }
  0x7d   :  { %1020 = vmatprep.subr.bf16.mxu1 %v1863_v21  ;;  %v97_v21 = vld [vmem:[#allocation2 + $0x70] sm:$0xff] }
  0x7f   :  { %978 = vmatpush1.bf16.msra.mxu0 %v1858_v22  ;;  %v103_v22 = vpack.c.bf16 %v95_v19, %v87_v18 }
  0x80   :  { %1021 = vmatpush1.bf16.msra.mxu1 %v1861_v23  ;;  %979 = vmatprep.subr.bf16.mxu0 %v1866_v24  ;;  %v105_v23 = vpack.c.bf16 %v97_v21, %v89_v20  ;;  %v1942_v24 = vld [vmem:[#allocation7 + $0x70] ss:$8 sps:$4 sm:$0xff]  }
  0x81   :  { %1022 = vmatprep.subr.bf16.mxu1 %v1869_v25  ;;  %v1944_v25 = vld [vmem:[#allocation7 + $0x74] ss:$8 sps:$4 sm:$0xff]  }
  0x83   :  { %980 = vmatpush1.bf16.msra.mxu0 %v1864_v26  ;;  %v1947_v26 = vld [vmem:[#allocation7 + $0x64] ss:$8 sps:$4 sm:$0xff]  }
  0x84   :  { %1023 = vmatpush1.bf16.msra.mxu1 %v1867_v27  ;;  %981 = vmatprep.subr.bf16.mxu0 %v1872_v28  ;;  %v1945_v27 = vld [vmem:[#allocation7 + $0x60] ss:$8 sps:$4 sm:$0xff]   ;;  %v1950_v28 = vld [vmem:[#allocation7 + $0x54] ss:$8 sps:$4 sm:$0xff]  }
  0x85   :  { %1024 = vmatprep.subr.bf16.mxu1 %v1875_v29  ;;  %v1948_v29 = vld [vmem:[#allocation7 + $0x50] ss:$8 sps:$4 sm:$0xff]  }
  0x87   :  { %982 = vmatpush1.bf16.msra.mxu0 %v1870_v30  ;;  %v1953_v30 = vld [vmem:[#allocation7 + $0x44] ss:$8 sps:$4 sm:$0xff]  }
  0x88   :  { %1025 = vmatpush1.bf16.msra.mxu1 %v1873_v31  ;;  %983 = vmatprep.subr.bf16.mxu0 %v1878_v32  ;;  %v1951_v31 = vld [vmem:[#allocation7 + $0x40] ss:$8 sps:$4 sm:$0xff]   ;;  %v1956_v32 = vld [vmem:[#allocation7 + $0x34] ss:$8 sps:$4 sm:$0xff]  }
  0x89   :  { %1026 = vmatprep.subr.bf16.mxu1 %v1881_v33  ;;  %v1954_v33 = vld [vmem:[#allocation7 + $0x30] ss:$8 sps:$4 sm:$0xff]  }
  0x8b   :  { %984 = vmatpush1.bf16.msra.mxu0 %v1876_v34  ;;  %v1959_v34 = vld [vmem:[#allocation7 + $0x24] ss:$8 sps:$4 sm:$0xff]  }
  0x8c   :  { %1027 = vmatpush1.bf16.msra.mxu1 %v1879_v35  ;;  %985 = vmatprep.subr.bf16.mxu0 %v1884_v36  ;;  %v1957_v35 = vld [vmem:[#allocation7 + $0x20] ss:$8 sps:$4 sm:$0xff]   ;;  %v1962_v36 = vld [vmem:[#allocation7 + $0x14] ss:$8 sps:$4 sm:$0xff]  }
  0x8d   :  { %1028 = vmatprep.subr.bf16.mxu1 %v1887_v37  ;;  %v1960_v37 = vld [vmem:[#allocation7 + $0x10] ss:$8 sps:$4 sm:$0xff]  }
  0x8f   :  { %986 = vmatpush1.bf16.msra.mxu0 %v1882_v38  ;;  %v1965_v38 = vld [vmem:[#allocation7 + $0x4] ss:$8 sps:$4 sm:$0xff]  }
  0x90   :  { %1029 = vmatpush1.bf16.msra.mxu1 %v1885_v39  ;;  %987 = vmatprep.subr.bf16.mxu0 %v1890_v43  ;;  %v1963_v39 = vld [vmem:[#allocation7] ss:$8 sps:$4 sm:$0xff]  }
  0x91   :  { %1030 = vmatprep.subr.bf16.mxu1 %v1893_v44  ;;  %v1969_v43 = vld [vmem:[#allocation7 + $0xe0] ss:$8 sps:$4 sm:$0xff]   ;;  %v1974_v44 = vld [vmem:[#allocation7 + $0xd4] ss:$8 sps:$4 sm:$0xff]  }
  0x93   :  { %988 = vmatpush1.bf16.msra.mxu0 %v1888_v47  ;;  %v1975_v47 = vld [vmem:[#allocation7 + $0xc0] ss:$8 sps:$4 sm:$0xff]  }
  0x94   :  { %1031 = vmatpush1.bf16.msra.mxu1 %v1891_v48  ;;  %989 = vmatprep.subr.bf16.mxu0 %v1896_v50  ;;  %v1980_v48 = vld [vmem:[#allocation7 + $0xb4] ss:$8 sps:$4 sm:$0xff]   ;;  %v1983_v50 = vld [vmem:[#allocation7 + $0xa4] ss:$8 sps:$4 sm:$0xff]  }
  0x95   :  { %1032 = vmatprep.subr.bf16.mxu1 %v1899_v51  ;;  %v1981_v51 = vld [vmem:[#allocation7 + $0xa0] ss:$8 sps:$4 sm:$0xff]  }
  0x97   :  { %990 = vmatpush2.bf16.msra.mxu0 %v1894_v52  ;;  %v1986_v52 = vld [vmem:[#allocation7 + $0x94] ss:$8 sps:$4 sm:$0xff]  }
  0x98   :  { %1033 = vmatpush2.bf16.msra.mxu1 %v1897_v53  ;;  %991 = vmatprep.subr.bf16.mxu0 %v1902_v54  ;;  %v1984_v53 = vld [vmem:[#allocation7 + $0x90] ss:$8 sps:$4 sm:$0xff]   ;;  %v1987_v54 = vld [vmem:[#allocation7 + $0x80] ss:$8 sps:$4 sm:$0xff]  }
  0x99   :  { %1034 = vmatprep.subr.bf16.mxu1 %v1905_v55  ;;  %v1989_v55 = vld [vmem:[#allocation7 + $0x84] ss:$8 sps:$4 sm:$0xff]  }
  0x9b   :  { %992 = vmatpush2.bf16.msra.mxu0 %v1900_v56  ;;  %v1990_v56 = vld [vmem:[#allocation8 + $0x78] sm:$0xff]  }
  0x9c   :  { %1035 = vmatpush2.bf16.msra.mxu1 %v1903_v57  ;;  %993 = vmatprep.subr.bf16.mxu0 %v1908_v58  ;;  %v1991_v57 = vld [vmem:[#allocation8 + $0x38] sm:$0xff]   ;;  %v1992_v58 = vld [vmem:[#allocation8 + $0x70] sm:$0xff]  }
  0x9d   :  { %1036 = vmatprep.subr.bf16.mxu1 %v1911_v59  ;;  %v1993_v59 = vld [vmem:[#allocation8 + $0x30] sm:$0xff]  }
  0x9f   :  { %994 = vmatpush2.bf16.msra.mxu0 %v1906_v60  ;;  %v1994_v60 = vld [vmem:[#allocation8 + $0x68] sm:$0xff]  }
  0xa0   :  { %1037 = vmatpush2.bf16.msra.mxu1 %v1909_v61  ;;  %995 = vmatprep.subr.bf16.mxu0 %v1914_v62  ;;  %v1995_v61 = vld [vmem:[#allocation8 + $0x28] sm:$0xff]   ;;  %v1996_v62 = vld [vmem:[#allocation8 + $0x60] sm:$0xff]  }
  0xa1   :  { %1038 = vmatprep.subr.bf16.mxu1 %v1917_v63  ;;  %v1997_v63 = vld [vmem:[#allocation8 + $0x20] sm:$0xff]  }
  0xa3   :  { %996 = vmatpush2.bf16.msra.mxu0 %v1912_v0  ;;  %v1998_v0 = vld [vmem:[#allocation8 + $0x58] sm:$0xff]  }
  0xa4   :  { %1039 = vmatpush2.bf16.msra.mxu1 %v1915_v1  ;;  %997 = vmatprep.subr.bf16.mxu0 %v1920_v2  ;;  %v237_v1 = vlaneseq }
  0xa5   :  { %1040 = vmatprep.subr.bf16.mxu1 %v1923_v3 }
  0xa6   :  { %v2190_v2 = vshrl.u32 %v237_v1, 7 }
  0xa7   :  { %998 = vmatpush2.bf16.msra.mxu0 %v1918_v4 }
  0xa8   :  { %1041 = vmatpush2.bf16.msra.mxu1 %v1921_v5  ;;  %999 = vmatprep.subr.bf16.mxu0 %v1926_v6  ;;  %v239_v5 = vsub.s32 0, %v2190_v2  ;;  %v243_v6 = vsub.s32 1, %v2190_v2 }
  0xa9   :  { %1042 = vmatprep.subr.bf16.mxu1 %v1929_v7  ;;  %v235_v7 = vld [vmem:[%s2219_s2] sm:$0x3] }
  0xab   :  { %1000 = vmatpush2.bf16.msra.mxu0 %v1924_v8 }
  0xac   :  { %1043 = vmatpush2.bf16.msra.mxu1 %v1927_v9  ;;  %1001 = vmatprep.subr.bf16.mxu0 %v1932_v10  ;;  %v240_v10 = vrot.slane %v235_v7, %v239_v5 }
  0xad   :  { %1044 = vmatprep.subr.bf16.mxu1 %v1935_v11  ;;  %v244_v11 = vrot.slane %v235_v7, %v243_v6 }
  0xaf   :  { %1002 = vmatpush2.bf16.msra.mxu0 %v1930_v12 }
  0xb0   :  { %1045 = vmatpush2.bf16.msra.mxu1 %v1933_v13  ;;  %1003 = vmatprep.subr.bf16.mxu0 %v1938_v14 }
  0xb1   :  { %1046 = vmatprep.subr.bf16.mxu1 %v1941_v15 }
  0xb3   :  { %1004 = vmatpush2.bf16.msra.mxu0 %v1936_v16 }
  0xb4   :  { %1047 = vmatpush2.bf16.msra.mxu1 %v1939_v17  ;;  %1277 = vmatprep.subr.bf16.mxu0 %v1944_v25 }
  0xb5   :  { %1718 = vmatprep.subr.bf16.mxu1 %v1990_v56  ;;  %v2005_v56 = vld [vmem:[#allocation8] sm:$0xff]  }
  0xb6   :  { %1006 = vmatmul.mubr.bf16.vlgmr.msra.gmra.mxu0 %v103_v22 }
  0xb7   :  { %1049 = vmatmul.mubr.bf16.vlgmr.msra.gmra.mxu1 %v105_v23  ;;  %1278 = vmatpush1.bf16.msra.mxu0 %v1942_v24 }
  0xb8   :  { %1279 = vmatprep.subr.bf16.mxu0 %v1947_v26  ;;  %1719 = vmatpush3.bf16.msra.mxu1 %v1991_v57  ;;  %v1105_v57 = vld [vmem:[%s2221_s4] sm:$0x3] }
  0xb9   :  { %1720 = vmatprep.subr.bf16.mxu1 %v1992_v58  ;;  %v1114_v58 = vrot.slane %v1105_v57, %v243_v6 }
  0xbb   :  { %1280 = vmatpush1.bf16.msra.mxu0 %v1945_v27 }
  0xbc   :  { %1281 = vmatprep.subr.bf16.mxu0 %v1950_v28  ;;  %1721 = vmatpush3.bf16.msra.mxu1 %v1993_v59  ;;  %v1110_v59 = vrot.slane %v1105_v57, %v239_v5 }
  0xbd   :  { %1722 = vmatprep.subr.bf16.mxu1 %v1994_v60 }
  0xbf   :  { %1282 = vmatpush1.bf16.msra.mxu0 %v1948_v29 }
  0xc0   :  { %1283 = vmatprep.subr.bf16.mxu0 %v1953_v30  ;;  %1723 = vmatpush3.bf16.msra.mxu1 %v1995_v61 }
  0xc1   :  { %1724 = vmatprep.subr.bf16.mxu1 %v1996_v62 }
  0xc3   :  { %1284 = vmatpush1.bf16.msra.mxu0 %v1951_v31 }
  0xc4   :  { %1285 = vmatprep.subr.bf16.mxu0 %v1956_v32  ;;  %1725 = vmatpush3.bf16.msra.mxu1 %v1997_v63 }
  0xc5   :  { %1726 = vmatprep.subr.bf16.mxu1 %v1998_v0 }
  0xc7   :  { %1286 = vmatpush1.bf16.msra.mxu0 %v1954_v33 }
  0xc8   :  { %1287 = vmatprep.subr.bf16.mxu0 %v1959_v34 }
  0xcb   :  { %1288 = vmatpush1.bf16.msra.mxu0 %v1957_v35 }
  0xcc   :  { %1289 = vmatprep.subr.bf16.mxu0 %v1962_v36 }
  0xcf   :  { %1290 = vmatpush1.bf16.msra.mxu0 %v1960_v37 }
  0xd0   :  { %1291 = vmatprep.subr.bf16.mxu0 %v1965_v38 }
  0xd3   :  { %1292 = vmatpush1.bf16.msra.mxu0 %v1963_v39 }
  0xd4   :  { %1293 = vmatprep.subr.bf16.mxu0 %v1968_v40 }
  0xd7   :  { %1294 = vmatpush2.bf16.msra.mxu0 %v1966_v41 }
  0xd8   :  { %1295 = vmatprep.subr.bf16.mxu0 %v1971_v42 }
  0xdb   :  { %1296 = vmatpush2.bf16.msra.mxu0 %v1969_v43 }
  0xdc   :  { %1297 = vmatprep.subr.bf16.mxu0 %v1974_v44 }
  0xdf   :  { %1298 = vmatpush2.bf16.msra.mxu0 %v1972_v45 }
  0xe0   :  { %1299 = vmatprep.subr.bf16.mxu0 %v1977_v46 }
  0xe3   :  { %1300 = vmatpush2.bf16.msra.mxu0 %v1975_v47 }
  0xe4   :  { %1301 = vmatprep.subr.bf16.mxu0 %v1980_v48 }
  0xe7   :  { %1302 = vmatpush2.bf16.msra.mxu0 %v1978_v49 }
  0xe8   :  { %1303 = vmatprep.subr.bf16.mxu0 %v1983_v50  ;;  %v1999_v50 = vld [vmem:[#allocation8 + $0x18] sm:$0xff]  }
  0xe9   :  { %1727 = vmatpush3.bf16.msra.mxu1 %v1999_v50 }
  0xeb   :  { %1304 = vmatpush2.bf16.msra.mxu0 %v1981_v51  ;;  %v2000_v51 = vld [vmem:[#allocation8 + $0x50] sm:$0xff]  }
  0xec   :  { %1305 = vmatprep.subr.bf16.mxu0 %v1986_v52  ;;  %v2001_v52 = vld [vmem:[#allocation8 + $0x10] sm:$0xff]   ;;  %1728 = vmatprep.subr.bf16.mxu1 %v2000_v51 }
  0xed   :  { %1729 = vmatpush3.bf16.msra.mxu1 %v2001_v52 }
  0xef   :  { %1306 = vmatpush2.bf16.msra.mxu0 %v1984_v53  ;;  %v2002_v53 = vld [vmem:[#allocation8 + $0x48] sm:$0xff]  }
  0xf0   :  { %1307 = vmatprep.subr.bf16.mxu0 %v1989_v55  ;;  %1730 = vmatprep.subr.bf16.mxu1 %v2002_v53  ;;  %v2004_v55 = vld [vmem:[#allocation8 + $0x40] sm:$0xff]  }
  0xf3   :  { %1308 = vmatpush2.bf16.msra.mxu0 %v1987_v54  ;;  %v2003_v54 = vld [vmem:[#allocation8 + $0x8] sm:$0xff]  }
  0xf4   :  { %1731 = vmatpush3.bf16.msra.mxu1 %v2003_v54 }
  0xf5   :  { %1732 = vmatprep.subr.bf16.mxu1 %v2004_v55 }
  0xf8   :  { %1733 = vmatpush3.bf16.msra.mxu1 %v2005_v56 }
 0x136   :  { %v921_v3 = vpop.f32.mrf.mxu0 }
 0x137   :  { %v964_v4 = vpop.f32.mrf.mxu1  ;;  %v922_v14 = vadd.f32 %v921_v3, %v240_v10 }
 0x138   :  { %v923_v8 = vpop.f32.mrf.mxu0 }
 0x139   :  { %v966_v9 = vpop.f32.mrf.mxu1  ;;  %v924_v15 = vadd.f32 %v923_v8, %v244_v11  ;;  %v965_v21 = vadd.f32 %v964_v4, %v922_v14 }
 0x13a   :  { %v925_v12 = vpop.f32.mrf.mxu0 }
 0x13b   :  { %v968_v13 = vpop.f32.mrf.mxu1  ;;  %v926_v18 = vadd.f32 %v925_v12, %v240_v10  ;;  %v967_v22 = vadd.f32 %v966_v9, %v924_v15  ;;  %v1701_v15 = vld [vmem:[%s2223_s6] ss:$0 sm:$0xff]  ;;  %s2131_s6 = smov [#allocation10]  }
 0x13c   :  { %v927_v16 = vpop.f32.mrf.mxu0  ;;  %s1527_s26 = sshll.u32 %s2131_s6, 4  ;;  %s1528_s26 = int_to_ptr.vmem [resolvable:$true] %s1527_s26 }
 0x13d   :  { %v970_v17 = vpop.f32.mrf.mxu1  ;;  %v928_v23 = vadd.f32 %v927_v16, %v244_v11  ;;  %v969_v26 = vadd.f32 %v968_v13, %v926_v18  ;;  %s2094_s29 = scalar_lea.vmem %s1528_s26, 256  ;;  %p2099_p7 = scmp.lt.s32.totalorder %s1528_s26, %s1528_s26 }
 0x13e   :  { %p2095_p6 = scmp.ne.s32.totalorder %s1528_s26, %s2094_s29  ;;  %p2100_p8 = scmp.lt.s32.totalorder %s2094_s29, %s2094_s29 }
 0x13f   :  { %v971_v32 = vadd.f32 %v970_v17, %v928_v23 }
 0x140   :  { %p2101_p9 = por %p2100_p8, %p2099_p7 }
 0x142   :  { %p2102_p10 = pnand %p2101_p9, %p2095_p6 }
 0x176   :  { %v1007_v19 = vpop.f32.mrf.mxu0 }
 0x177   :  { %v1050_v20 = vpop.f32.mrf.mxu1  ;;  %v1008_v27 = vadd.f32 %v1007_v19, %v965_v21 }
 0x178   :  { %v1009_v24 = vpop.f32.mrf.mxu0 }
 0x179   :  { %v1052_v25 = vpop.f32.mrf.mxu1  ;;  %v1010_v28 = vadd.f32 %v1009_v24, %v967_v22  ;;  %v1051_v35 = vadd.f32 %v1050_v20, %v1008_v27 }
 0x17a   :  { %v1011_v29 = vpop.f32.mrf.mxu0 }
 0x17b   :  { %v1012_v30 = vadd.f32 %v1011_v29, %v969_v26  ;;  %v1054_v31 = vpop.f32.mrf.mxu1  ;;  %v1053_v33 = vadd.f32 %v1052_v25, %v1010_v28  ;;  %v1063_v42 = vmul.f32 0.2, %v1051_v35  ;;  %vm1059_vm2 = vcmp.gt.f32.partialorder %v1051_v35, 0.0 }
 0x17c   :  { %v1013_v34 = vpop.f32.mrf.mxu0 }
 0x17d   :  { %v1055_v36 = vadd.f32 %v1054_v31, %v1012_v30  ;;  %v1014_v37 = vadd.f32 %v1013_v34, %v971_v32  ;;  %v1056_v39 = vpop.f32.mrf.mxu1  ;;  %v1064_v40 = vmul.f32 0.2, %v1053_v33  ;;  %vm1060_vm1 = vcmp.gt.f32.partialorder %v1053_v33, 0.0 }
 0x17e   :  { %v1067_v47 = vsel %vm1059_vm2, %v1051_v35, %v1063_v42 }
 0x17f   :  { %v1065_v38 = vmul.f32 0.2, %v1055_v36  ;;  %vm1061_vm0 = vcmp.gt.f32.partialorder %v1055_v36, 0.0  ;;  %v1057_v41 = vadd.f32 %v1056_v39, %v1014_v37  ;;  %v1068_v45 = vsel %vm1060_vm1, %v1053_v33, %v1064_v40 }
 0x181   :  { %vm1062_vm3 = vcmp.gt.f32.partialorder %v1057_v41, 0.0  ;;  %v1066_v43 = vmul.f32 0.2, %v1057_v41  ;;  %v1069_v44 = vsel %vm1061_vm0, %v1055_v36, %v1065_v38 }
 0x182   :  { %v1071_v49 = vpack.c.bf16 %v1069_v44, %v1067_v47 }
 0x183   :  { %v1070_v46 = vsel %vm1062_vm3, %v1057_v41, %v1066_v43 }
 0x184   :  { %v1072_v48 = vpack.c.bf16 %v1070_v46, %v1068_v45 }
 0x186   :  { %1309 = vmatprep.mubr.bf16.mxu0 %v1072_v48 }
 0x187   :  { %1310 = vmatmul.mubr.bf16.vlgmr.msra.gmra.mxu0 %v1071_v49 }
 0x247   :  { %v1311_v60 = vpop.f32.mrf.mxu0 }
 0x248   :  { %v1312_v63 = vadd.f32 %v1311_v60, %v1110_v59 }
 0x249   :  { %v1313_v61 = vpop.f32.mrf.mxu0 }
 0x24a   :  { %v1314_v62 = vadd.f32 %v1313_v61, %v1114_v58  ;;  %v1324_v9 = vmul.f32 0.2, %v1312_v63  ;;  %vm1320_vm6 = vcmp.gt.f32.partialorder %v1312_v63, 0.0 }
 0x24b   :  { %v1315_v0 = vpop.f32.mrf.mxu0 }
 0x24c   :  { %v1316_v1 = vadd.f32 %v1315_v0, %v1110_v59  ;;  %v1325_v4 = vmul.f32 0.2, %v1314_v62  ;;  %vm1321_vm5 = vcmp.gt.f32.partialorder %v1314_v62, 0.0  ;;  %v1328_v5 = vsel %vm1320_vm6, %v1312_v63, %v1324_v9 }
 0x24d   :  { %v1317_v3 = vpop.f32.mrf.mxu0 }
 0x24e   :  { %vm1322_vm4 = vcmp.gt.f32.partialorder %v1316_v1, 0.0  ;;  %v1326_v7 = vmul.f32 0.2, %v1316_v1  ;;  %v1318_v8 = vadd.f32 %v1317_v3, %v1114_v58  ;;  %v1329_v11 = vsel %vm1321_vm5, %v1314_v62, %v1325_v4 }
 0x250   :  { %vm1323_vm7 = vcmp.gt.f32.partialorder %v1318_v8, 0.0  ;;  %v1327_v10 = vmul.f32 0.2, %v1318_v8  ;;  %v1330_v6 = vsel %vm1322_vm4, %v1316_v1, %v1326_v7 }
 0x251   :  { %v1332_v13 = vpack.c.bf16 %v1330_v6, %v1328_v5 }
 0x252   :  { %v1331_v2 = vsel %vm1323_vm7, %v1318_v8, %v1327_v10 }
 0x253   :  { %v1333_v12 = vpack.c.bf16 %v1331_v2, %v1329_v11 }
 0x255   :  { %1501 = vmatprep.mubr.bf16.mxu1 %v1333_v12 }
 0x256   :  { %1502 = vmatmul.mubr.bf16.vlgmr.msra.gmra.mxu1 %v1332_v13 }
 0x316   :  { %v1734_v14 = vpop.f32.mrf.mxu1 }
 0x318   :  { %v1735_v16 = vpop.f32.mrf.mxu1 }
 0x319   :  { %v1736_v17 = vadd.f32 %v1735_v16, %v1734_v14 }
 0x31a   :  { %v1737_v18 = vpop.f32.mrf.mxu1 }
 0x31b   :  { %v1504_v19 = vadd.f32 %v1736_v17, %v1701_v15 }
 0x31c   :  { %v1738_v20 = vpop.f32.mrf.mxu1 }
 0x31d   :  { %v1510_v21 = vsub.f32 0.0, %v1504_v19  ;;  %v1739_v22 = vadd.f32 %v1738_v20, %v1737_v18 }
 0x31f   :  { %v1512_v23 = vmul.f32 1.442695, %v1510_v21  ;;  %v1507_v24 = vadd.f32 %v1739_v22, %v1701_v15 }
 0x321   :  { %2006 = vpow2.f32 %v1512_v23  ;;  %v1511_v25 = vsub.f32 0.0, %v1507_v24 }
 0x323   :  { %v1514_v26 = vmul.f32 1.442695, %v1511_v25 }
 0x325   :  { %2008 = vpow2.f32 %v1514_v26 }
 0x32e   :  { %v2007_v27 = vpop.eup %2006 }
 0x32f   :  { %v1516_v28 = vadd.f32 1.0, %v2007_v27 }
 0x331   :  { %2010 = vrcp.f32 %v1516_v28 }
 0x332   :  { %v2009_v29 = vpop.eup %2008 }
 0x333   :  { %v1517_v30 = vadd.f32 1.0, %v2009_v29 }
 0x335   :  { %2012 = vrcp.f32 %v1517_v30 }
 0x33e   :  { %v2011_v31 = vpop.eup %2010 }
 0x33f   :  { %1520 = vst [vmem:[#allocation10] sm:$0xff] %v2011_v31 }
 0x342   :  { %v2013_v32 = vpop.eup %2012 }
 0x343   :  { %1521 = vst [vmem:[#allocation10 + $0x8] sm:$0xff] %v2013_v32 }
 0x344   :  { %2105 = shalt.err (!%p2102_p10)
}
 0x345   :  { %1533 = dma.vmem_to_hbm [thread:$0]  %s1528_s26, 256, %s2224_s7, [#allocation4], %s2123_s27, %s2123_s27, %s2124_s28  }
 0x346   :  { %2120 = dma.done.wait [#allocation4], 256  }
 0x347   :  { %2121 = vsyncadd [#allocation4], 4294967040 }
 0x348   :  { %1537 = vsyncpa [#allocation3], 1 }
 0x349   :  { %1538 = vsyncpa [#allocation6], 1 }
 0x34a   :  { %1539 = vsyncpa [#allocation9], 1 }
 0x34b   :  { %1540 = vsyncpa [#allocation4], 1 }

</bundles_post_ra>
